<compile_context>
chip_gen: v7x
topology: tpu7x:2x2x1
jax: 0.10.0
libtpu: 0.0.40
codegen_flags: <defaults>
</compile_context>

<pallas_src>
import jax
import jax.numpy as jnp
from jax.experimental import pallas as pl
from jax.experimental.pallas import tpu as pltpu


# ----------------------------------------------------------------------------
# Fused Pallas kernel (all GRU layers + FC)
# ----------------------------------------------------------------------------
def _make_gru_net_kernel(num_layers, T, B, H):
    """Build the fused GRU(+FC) kernel for static (num_layers, T, B, H)."""
    unroll = T <= 32  # fully unroll short recurrences for scheduler visibility

    def kernel(*refs):
        idx = 0
        gi0_ref = refs[idx]; idx += 1          # (T*B, 3H) hoisted layer-0 proj
        h0_ref = refs[idx]; idx += 1           # (L, B, H)
        layer_refs = []
        for l in range(num_layers):
            if l == 0:
                w_ih_ref, bfold_ref = None, None
            else:
                w_ih_ref, bfold_ref = refs[idx], refs[idx + 1]; idx += 2
            w_hh_ref, bhhn_ref = refs[idx], refs[idx + 1]; idx += 2
            layer_refs.append((w_ih_ref, bfold_ref, w_hh_ref, bhhn_ref))
        fcw_ref = refs[idx]; fcb_ref = refs[idx + 1]; idx += 2
        out_ref = refs[idx]; hN_ref = refs[idx + 1]; idx += 2
        if num_layers > 1:
            gi_scr = refs[idx]; seq_scr = refs[idx + 1]; idx += 2
        else:
            gi_scr, seq_scr = None, None

        h_last = None
        for l in range(num_layers):
            w_ih_ref, bfold_ref, w_hh_ref, bhhn_ref = layer_refs[l]
            w_hh = w_hh_ref[...]       # (H, 3H), loaded once, VMEM-resident
            b_hh_n = bhhn_ref[...]     # (1, H)  (n-gate hidden bias)

            if l == 0:
                # Precomputed in XLA; already includes b_ih + b_hh[r,z].
                gi_ref = gi0_ref
            else:
                # Hoisted input projection for this layer: ONE matmul with
                # M = T*B instead of T tiny per-step matmuls.
                gi_scr[...] = (
                    jnp.dot(seq_scr[...], w_ih_ref[...],
                            preferred_element_type=jnp.float32)
                    + bfold_ref[...])
                gi_ref = gi_scr

            write_seq = l < num_layers - 1

            def step(t, h_prev):
                row = pl.multiple_of(t * B, B)
                gi_t = gi_ref[pl.ds(row, B), :]                      # (B, 3H)
                gh = jnp.dot(h_prev, w_hh,
                             preferred_element_type=jnp.float32)     # (B, 3H)
                # PyTorch gate order: r, z, n
                r = jax.nn.sigmoid(gi_t[:, 0:H] + gh[:, 0:H])
                z = jax.nn.sigmoid(gi_t[:, H:2 * H] + gh[:, H:2 * H])
                n = jnp.tanh(gi_t[:, 2 * H:3 * H]
                             + r * (gh[:, 2 * H:3 * H] + b_hh_n))
                h_new = (1.0 - z) * n + z * h_prev
                if write_seq:
                    seq_scr[pl.ds(row, B), :] = h_new
                return h_new

            h_last = jax.lax.fori_loop(0, T, step, h0_ref[l], unroll=unroll)
            hN_ref[l] = h_last

        # out[:, -1, :] of a unidirectional GRU == final hidden of last layer,
        # so the FC is fused right here with no HBM round-trip.
        out_ref[...] = (jnp.dot(h_last, fcw_ref[...],
                                preferred_element_type=jnp.float32)
                        + fcb_ref[...])

    return kernel


# ----------------------------------------------------------------------------
# Wrapper
# ----------------------------------------------------------------------------
def _fold_bias_rz(b_ih, b_hh, H):
    # b_ih + b_hh for the r/z gates; the n gate keeps b_hh separate (r* term).
    return b_ih + jnp.concatenate(
        [b_hh[:, :2 * H], jnp.zeros((1, H), b_hh.dtype)], axis=-1)


@jax.jit
def gru_net_forward(params, x, h):
    """x: (B, T, input_size); h: (num_layers, B, hidden).

    Returns (out (B, output_size), h_new (num_layers, B, hidden)) — matches
    PyTorch GRUNet.forward.
    """
    x = x.astype(jnp.float32)
    h = h.astype(jnp.float32)
    B, T, _ = x.shape
    layers = params["layers"]
    L = len(layers)
    H = layers[0]["w_hh"].shape[0]
    Dout = params["fc_w"].shape[1]

    # Hoisted, time-invariant layer-0 input projection as one big matmul
    # (M = T*B) in XLA; output is time-major flattened (T*B, 3H).
    lp0 = layers[0]
    gi0 = (jnp.einsum("btd,dg->tbg", x, lp0["w_ih"],
                      preferred_element_type=jnp.float32)
           .reshape(T * B, 3 * H)
           + _fold_bias_rz(lp0["b_ih"], lp0["b_hh"], H))

    args = [gi0, h]
    for l, lp in enumerate(layers):
        if l > 0:
            args += [lp["w_ih"], _fold_bias_rz(lp["b_ih"], lp["b_hh"], H)]
        args += [lp["w_hh"], lp["b_hh"][:, 2 * H:]]
    args += [params["fc_w"], params["fc_b"]]

    scratch = []
    if L > 1:
        scratch = [pltpu.VMEM((T * B, 3 * H), jnp.float32),  # gi for layers >= 1
                   pltpu.VMEM((T * B, H), jnp.float32)]      # inter-layer sequence

    vmem_spec = pl.BlockSpec(memory_space=pltpu.MemorySpace.VMEM)
    out, h_new = pl.pallas_call(
        _make_gru_net_kernel(L, T, B, H),
        out_shape=(jax.ShapeDtypeStruct((B, Dout), jnp.float32),
                   jax.ShapeDtypeStruct((L, B, H), jnp.float32)),
        in_specs=[vmem_spec] * len(args),
        out_specs=(vmem_spec, vmem_spec),
        scratch_shapes=scratch,
    )(*args)
    return out, h_new


# ----------------------------------------------------------------------------
# Params (PyTorch-style init, weights stored pre-transposed, gate order r|z|n)
# ----------------------------------------------------------------------------
def init_gru_net_params(key, input_size, hidden_size, num_layers, output_size):
    k = 1.0 / jnp.sqrt(jnp.float32(hidden_size))
    params = {"layers": []}
    for layer in range(num_layers):
        din = input_size if layer == 0 else hidden_size
        key, k1, k2, k3, k4 = jax.random.split(key, 5)
        params["layers"].append({
            "w_ih": jax.random.uniform(k1, (din, 3 * hidden_size), jnp.float32, -k, k),
            "w_hh": jax.random.uniform(k2, (hidden_size, 3 * hidden_size), jnp.float32, -k, k),
            "b_ih": jax.random.uniform(k3, (1, 3 * hidden_size), jnp.float32, -k, k),
            "b_hh": jax.random.uniform(k4, (1, 3 * hidden_size), jnp.float32, -k, k),
        })
    key, k1, k2 = jax.random.split(key, 3)
    params["fc_w"] = jax.random.uniform(k1, (hidden_size, output_size), jnp.float32, -k, k)
    params["fc_b"] = jax.random.uniform(k2, (1, output_size), jnp.float32, -k, k)
    return params


# ----------------------------------------------------------------------------
# Pure-JAX reference (mirrors PyTorch GRU + Linear semantics)
# ----------------------------------------------------------------------------
def gru_net_reference(params, x, h):
    x = x.astype(jnp.float32)
    h = h.astype(jnp.float32)
    B, T, _ = x.shape
    H = params["layers"][0]["w_hh"].shape[0]
    layer_in = x
    h_fin = []
    for l, lp in enumerate(params["layers"]):
        h_l = h[l]
        outs = []
        for t in range(T):
            x_t = layer_in[:, t, :]
            gi = x_t @ lp["w_ih"] + lp["b_ih"]
            gh = h_l @ lp["w_hh"] + lp["b_hh"]
            r = jax.nn.sigmoid(gi[:, :H] + gh[:, :H])
            z = jax.nn.sigmoid(gi[:, H:2 * H] + gh[:, H:2 * H])
            n = jnp.tanh(gi[:, 2 * H:] + r * gh[:, 2 * H:])
            h_l = (1.0 - z) * n + z * h_l
            outs.append(h_l)
        layer_in = jnp.stack(outs, axis=1)
        h_fin.append(h_l)
    out = layer_in[:, -1, :] @ params["fc_w"] + params["fc_b"]
    return out, jnp.stack(h_fin, axis=0)


# ----------------------------------------------------------------------------
# Demo
# ----------------------------------------------------------------------------
if __name__ == "__main__":
    input_size = 16
    hidden_size = 32
    num_layers = 2
    output_size = 8
    batch = 2
    seq = 8

    root = jax.random.PRNGKey(0)
    k_params, k_x, k_h = jax.random.split(root, 3)

    params = init_gru_net_params(k_params, input_size, hidden_size,
                                 num_layers, output_size)
    x = jax.random.normal(k_x, (batch, seq, input_size), jnp.float32)
    h0 = jax.random.normal(k_h, (num_layers, batch, hidden_size), jnp.float32)

    out, h_new = gru_net_forward(params, x, h0)
    jax.block_until_ready((out, h_new))

    assert out.shape == (batch, output_size)
    assert h_new.shape == (num_layers, batch, hidden_size)

    out_ref, h_ref = gru_net_reference(params, x, h0)
    assert float(jnp.max(jnp.abs(out - out_ref))) < 1e-4
    assert float(jnp.max(jnp.abs(h_new - h_ref))) < 1e-4

    print("KERNEL_OK")
</pallas_src>

<mosaic_0001>
module attributes {stable_mosaic.version = 11 : i64} {
  func.func @kernel(%arg0: memref<16x96xf32, #tpu.memory_space<vmem>>, %arg1: memref<2x2x32xf32, #tpu.memory_space<vmem>>, %arg2: memref<32x96xf32, #tpu.memory_space<vmem>>, %arg3: memref<1x32xf32, #tpu.memory_space<vmem>>, %arg4: memref<32x96xf32, #tpu.memory_space<vmem>>, %arg5: memref<1x96xf32, #tpu.memory_space<vmem>>, %arg6: memref<32x96xf32, #tpu.memory_space<vmem>>, %arg7: memref<1x32xf32, #tpu.memory_space<vmem>>, %arg8: memref<32x8xf32, #tpu.memory_space<vmem>>, %arg9: memref<1x8xf32, #tpu.memory_space<vmem>>, %arg10: memref<2x8xf32, #tpu.memory_space<vmem>>, %arg11: memref<2x2x32xf32, #tpu.memory_space<vmem>>, %arg12: memref<16x96xf32, #tpu.memory_space<vmem>>, %arg13: memref<16x32xf32, #tpu.memory_space<vmem>>) attributes {dimension_semantics = [], scalar_prefetch = 0 : i64, scratch_operands = 2 : i64, tpu.core_type = #tpu.core_type<tc>} {
    %c0 = arith.constant 0 : index
    %c0_0 = arith.constant 0 : index
    %0 = vector.load %arg2[%c0, %c0_0] : memref<32x96xf32, #tpu.memory_space<vmem>>, vector<32x96xf32>
    %c0_1 = arith.constant 0 : index
    %c0_2 = arith.constant 0 : index
    %1 = vector.load %arg3[%c0_1, %c0_2] : memref<1x32xf32, #tpu.memory_space<vmem>>, vector<1x32xf32>
    %c0_3 = arith.constant 0 : index
    %c0_4 = arith.constant 0 : index
    %c0_5 = arith.constant 0 : index
    %2 = vector.load %arg1[%c0_3, %c0_4, %c0_5] : memref<2x2x32xf32, #tpu.memory_space<vmem>>, vector<1x2x32xf32>
    %3 = vector.shape_cast %2 : vector<1x2x32xf32> to vector<2x32xf32>
    %c0_i32 = arith.constant 0 : i32
    %c2_i32 = arith.constant 2 : i32
    %4 = arith.muli %c0_i32, %c2_i32 : i32
    %5 = tpu.assume_multiple %4, 2 : i32
    %6 = arith.index_cast %5 : i32 to index
    %c0_6 = arith.constant 0 : index
    %7 = vector.load %arg0[%6, %c0_6] : memref<16x96xf32, #tpu.memory_space<vmem>>, vector<2x96xf32>
    %cst = arith.constant dense<0.000000e+00> : vector<2x96xf32>
    %8 = tpu.matmul %3, %0, %cst {dimension_numbers = #tpu.dot_dimension_numbers<[1], [0], [0], [1], [0, 0, 1, 1], [], []>} : vector<2x32xf32>, vector<32x96xf32>, vector<2x96xf32> -> vector<2x96xf32>
    %9 = vector.extract_strided_slice %7 {offsets = [0, 0], sizes = [2, 32], strides = [1, 1]} : vector<2x96xf32> to vector<2x32xf32>
    %10 = vector.extract_strided_slice %8 {offsets = [0, 0], sizes = [2, 32], strides = [1, 1]} : vector<2x96xf32> to vector<2x32xf32>
    %11 = arith.addf %9, %10 : vector<2x32xf32>
    %12 = arith.negf %11 : vector<2x32xf32>
    %13 = math.exp %12 : vector<2x32xf32>
    %cst_7 = arith.constant 1.000000e+00 : f32
    %14 = vector.broadcast %cst_7 : f32 to vector<2x32xf32>
    %15 = arith.addf %14, %13 : vector<2x32xf32>
    %16 = arith.divf %14, %15 : vector<2x32xf32>
    %17 = vector.extract_strided_slice %7 {offsets = [0, 32], sizes = [2, 32], strides = [1, 1]} : vector<2x96xf32> to vector<2x32xf32>
    %18 = vector.extract_strided_slice %8 {offsets = [0, 32], sizes = [2, 32], strides = [1, 1]} : vector<2x96xf32> to vector<2x32xf32>
    %19 = arith.addf %17, %18 : vector<2x32xf32>
    %20 = arith.negf %19 : vector<2x32xf32>
    %21 = math.exp %20 : vector<2x32xf32>
    %cst_8 = arith.constant 1.000000e+00 : f32
    %22 = vector.broadcast %cst_8 : f32 to vector<2x32xf32>
    %23 = arith.addf %22, %21 : vector<2x32xf32>
    %24 = arith.divf %22, %23 : vector<2x32xf32>
    %25 = vector.extract_strided_slice %7 {offsets = [0, 64], sizes = [2, 32], strides = [1, 1]} : vector<2x96xf32> to vector<2x32xf32>
    %26 = vector.extract_strided_slice %8 {offsets = [0, 64], sizes = [2, 32], strides = [1, 1]} : vector<2x96xf32> to vector<2x32xf32>
    %27 = vector.broadcast %1 : vector<1x32xf32> to vector<2x32xf32>
    %28 = arith.addf %26, %27 : vector<2x32xf32>
    %29 = arith.mulf %16, %28 : vector<2x32xf32>
    %30 = arith.addf %25, %29 : vector<2x32xf32>
    %31 = math.tanh %30 : vector<2x32xf32>
    %cst_9 = arith.constant 1.000000e+00 : f32
    %32 = vector.broadcast %cst_9 : f32 to vector<2x32xf32>
    %33 = arith.subf %32, %24 : vector<2x32xf32>
    %34 = arith.mulf %33, %31 : vector<2x32xf32>
    %35 = arith.mulf %24, %3 : vector<2x32xf32>
    %36 = arith.addf %34, %35 : vector<2x32xf32>
    %37 = arith.index_cast %5 : i32 to index
    %c0_10 = arith.constant 0 : index
    %38 = vector.load %arg13[%37, %c0_10] : memref<16x32xf32, #tpu.memory_space<vmem>>, vector<2x32xf32>
    tpu.vector_store %arg13[%37, %c0_10], %36 {strides = array<i32>} : memref<16x32xf32, #tpu.memory_space<vmem>>, vector<2x32xf32>,
    %c1_i32 = arith.constant 1 : i32
    %c2_i32_11 = arith.constant 2 : i32
    %39 = arith.muli %c1_i32, %c2_i32_11 : i32
    %40 = tpu.assume_multiple %39, 2 : i32
    %41 = arith.index_cast %40 : i32 to index
    %c0_12 = arith.constant 0 : index
    %42 = vector.load %arg0[%41, %c0_12] : memref<16x96xf32, #tpu.memory_space<vmem>>, vector<2x96xf32>
    %cst_13 = arith.constant dense<0.000000e+00> : vector<2x96xf32>
    %43 = tpu.matmul %36, %0, %cst_13 {dimension_numbers = #tpu.dot_dimension_numbers<[1], [0], [0], [1], [0, 0, 1, 1], [], []>} : vector<2x32xf32>, vector<32x96xf32>, vector<2x96xf32> -> vector<2x96xf32>
    %44 = vector.extract_strided_slice %42 {offsets = [0, 0], sizes = [2, 32], strides = [1, 1]} : vector<2x96xf32> to vector<2x32xf32>
    %45 = vector.extract_strided_slice %43 {offsets = [0, 0], sizes = [2, 32], strides = [1, 1]} : vector<2x96xf32> to vector<2x32xf32>
    %46 = arith.addf %44, %45 : vector<2x32xf32>
    %47 = arith.negf %46 : vector<2x32xf32>
    %48 = math.exp %47 : vector<2x32xf32>
    %cst_14 = arith.constant 1.000000e+00 : f32
    %49 = vector.broadcast %cst_14 : f32 to vector<2x32xf32>
    %50 = arith.addf %49, %48 : vector<2x32xf32>
    %51 = arith.divf %49, %50 : vector<2x32xf32>
    %52 = vector.extract_strided_slice %42 {offsets = [0, 32], sizes = [2, 32], strides = [1, 1]} : vector<2x96xf32> to vector<2x32xf32>
    %53 = vector.extract_strided_slice %43 {offsets = [0, 32], sizes = [2, 32], strides = [1, 1]} : vector<2x96xf32> to vector<2x32xf32>
    %54 = arith.addf %52, %53 : vector<2x32xf32>
    %55 = arith.negf %54 : vector<2x32xf32>
    %56 = math.exp %55 : vector<2x32xf32>
    %cst_15 = arith.constant 1.000000e+00 : f32
    %57 = vector.broadcast %cst_15 : f32 to vector<2x32xf32>
    %58 = arith.addf %57, %56 : vector<2x32xf32>
    %59 = arith.divf %57, %58 : vector<2x32xf32>
    %60 = vector.extract_strided_slice %42 {offsets = [0, 64], sizes = [2, 32], strides = [1, 1]} : vector<2x96xf32> to vector<2x32xf32>
    %61 = vector.extract_strided_slice %43 {offsets = [0, 64], sizes = [2, 32], strides = [1, 1]} : vector<2x96xf32> to vector<2x32xf32>
    %62 = vector.broadcast %1 : vector<1x32xf32> to vector<2x32xf32>
    %63 = arith.addf %61, %62 : vector<2x32xf32>
    %64 = arith.mulf %51, %63 : vector<2x32xf32>
    %65 = arith.addf %60, %64 : vector<2x32xf32>
    %66 = math.tanh %65 : vector<2x32xf32>
    %cst_16 = arith.constant 1.000000e+00 : f32
    %67 = vector.broadcast %cst_16 : f32 to vector<2x32xf32>
    %68 = arith.subf %67, %59 : vector<2x32xf32>
    %69 = arith.mulf %68, %66 : vector<2x32xf32>
    %70 = arith.mulf %59, %36 : vector<2x32xf32>
    %71 = arith.addf %69, %70 : vector<2x32xf32>
    %72 = arith.index_cast %40 : i32 to index
    %c0_17 = arith.constant 0 : index
    %73 = vector.load %arg13[%72, %c0_17] : memref<16x32xf32, #tpu.memory_space<vmem>>, vector<2x32xf32>
    tpu.vector_store %arg13[%72, %c0_17], %71 {strides = array<i32>} : memref<16x32xf32, #tpu.memory_space<vmem>>, vector<2x32xf32>,
    %c2_i32_18 = arith.constant 2 : i32
    %c2_i32_19 = arith.constant 2 : i32
    %74 = arith.muli %c2_i32_18, %c2_i32_19 : i32
    %75 = tpu.assume_multiple %74, 2 : i32
    %76 = arith.index_cast %75 : i32 to index
    %c0_20 = arith.constant 0 : index
    %77 = vector.load %arg0[%76, %c0_20] : memref<16x96xf32, #tpu.memory_space<vmem>>, vector<2x96xf32>
    %cst_21 = arith.constant dense<0.000000e+00> : vector<2x96xf32>
    %78 = tpu.matmul %71, %0, %cst_21 {dimension_numbers = #tpu.dot_dimension_numbers<[1], [0], [0], [1], [0, 0, 1, 1], [], []>} : vector<2x32xf32>, vector<32x96xf32>, vector<2x96xf32> -> vector<2x96xf32>
    %79 = vector.extract_strided_slice %77 {offsets = [0, 0], sizes = [2, 32], strides = [1, 1]} : vector<2x96xf32> to vector<2x32xf32>
    %80 = vector.extract_strided_slice %78 {offsets = [0, 0], sizes = [2, 32], strides = [1, 1]} : vector<2x96xf32> to vector<2x32xf32>
    %81 = arith.addf %79, %80 : vector<2x32xf32>
    %82 = arith.negf %81 : vector<2x32xf32>
    %83 = math.exp %82 : vector<2x32xf32>
    %cst_22 = arith.constant 1.000000e+00 : f32
    %84 = vector.broadcast %cst_22 : f32 to vector<2x32xf32>
    %85 = arith.addf %84, %83 : vector<2x32xf32>
    %86 = arith.divf %84, %85 : vector<2x32xf32>
    %87 = vector.extract_strided_slice %77 {offsets = [0, 32], sizes = [2, 32], strides = [1, 1]} : vector<2x96xf32> to vector<2x32xf32>
    %88 = vector.extract_strided_slice %78 {offsets = [0, 32], sizes = [2, 32], strides = [1, 1]} : vector<2x96xf32> to vector<2x32xf32>
    %89 = arith.addf %87, %88 : vector<2x32xf32>
    %90 = arith.negf %89 : vector<2x32xf32>
    %91 = math.exp %90 : vector<2x32xf32>
    %cst_23 = arith.constant 1.000000e+00 : f32
    %92 = vector.broadcast %cst_23 : f32 to vector<2x32xf32>
    %93 = arith.addf %92, %91 : vector<2x32xf32>
    %94 = arith.divf %92, %93 : vector<2x32xf32>
    %95 = vector.extract_strided_slice %77 {offsets = [0, 64], sizes = [2, 32], strides = [1, 1]} : vector<2x96xf32> to vector<2x32xf32>
    %96 = vector.extract_strided_slice %78 {offsets = [0, 64], sizes = [2, 32], strides = [1, 1]} : vector<2x96xf32> to vector<2x32xf32>
    %97 = vector.broadcast %1 : vector<1x32xf32> to vector<2x32xf32>
    %98 = arith.addf %96, %97 : vector<2x32xf32>
    %99 = arith.mulf %86, %98 : vector<2x32xf32>
    %100 = arith.addf %95, %99 : vector<2x32xf32>
    %101 = math.tanh %100 : vector<2x32xf32>
    %cst_24 = arith.constant 1.000000e+00 : f32
    %102 = vector.broadcast %cst_24 : f32 to vector<2x32xf32>
    %103 = arith.subf %102, %94 : vector<2x32xf32>
    %104 = arith.mulf %103, %101 : vector<2x32xf32>
    %105 = arith.mulf %94, %71 : vector<2x32xf32>
    %106 = arith.addf %104, %105 : vector<2x32xf32>
    %107 = arith.index_cast %75 : i32 to index
    %c0_25 = arith.constant 0 : index
    %108 = vector.load %arg13[%107, %c0_25] : memref<16x32xf32, #tpu.memory_space<vmem>>, vector<2x32xf32>
    tpu.vector_store %arg13[%107, %c0_25], %106 {strides = array<i32>} : memref<16x32xf32, #tpu.memory_space<vmem>>, vector<2x32xf32>,
    %c3_i32 = arith.constant 3 : i32
    %c2_i32_26 = arith.constant 2 : i32
    %109 = arith.muli %c3_i32, %c2_i32_26 : i32
    %110 = tpu.assume_multiple %109, 2 : i32
    %111 = arith.index_cast %110 : i32 to index
    %c0_27 = arith.constant 0 : index
    %112 = vector.load %arg0[%111, %c0_27] : memref<16x96xf32, #tpu.memory_space<vmem>>, vector<2x96xf32>
    %cst_28 = arith.constant dense<0.000000e+00> : vector<2x96xf32>
    %113 = tpu.matmul %106, %0, %cst_28 {dimension_numbers = #tpu.dot_dimension_numbers<[1], [0], [0], [1], [0, 0, 1, 1], [], []>} : vector<2x32xf32>, vector<32x96xf32>, vector<2x96xf32> -> vector<2x96xf32>
    %114 = vector.extract_strided_slice %112 {offsets = [0, 0], sizes = [2, 32], strides = [1, 1]} : vector<2x96xf32> to vector<2x32xf32>
    %115 = vector.extract_strided_slice %113 {offsets = [0, 0], sizes = [2, 32], strides = [1, 1]} : vector<2x96xf32> to vector<2x32xf32>
    %116 = arith.addf %114, %115 : vector<2x32xf32>
    %117 = arith.negf %116 : vector<2x32xf32>
    %118 = math.exp %117 : vector<2x32xf32>
    %cst_29 = arith.constant 1.000000e+00 : f32
    %119 = vector.broadcast %cst_29 : f32 to vector<2x32xf32>
    %120 = arith.addf %119, %118 : vector<2x32xf32>
    %121 = arith.divf %119, %120 : vector<2x32xf32>
    %122 = vector.extract_strided_slice %112 {offsets = [0, 32], sizes = [2, 32], strides = [1, 1]} : vector<2x96xf32> to vector<2x32xf32>
    %123 = vector.extract_strided_slice %113 {offsets = [0, 32], sizes = [2, 32], strides = [1, 1]} : vector<2x96xf32> to vector<2x32xf32>
    %124 = arith.addf %122, %123 : vector<2x32xf32>
    %125 = arith.negf %124 : vector<2x32xf32>
    %126 = math.exp %125 : vector<2x32xf32>
    %cst_30 = arith.constant 1.000000e+00 : f32
    %127 = vector.broadcast %cst_30 : f32 to vector<2x32xf32>
    %128 = arith.addf %127, %126 : vector<2x32xf32>
    %129 = arith.divf %127, %128 : vector<2x32xf32>
    %130 = vector.extract_strided_slice %112 {offsets = [0, 64], sizes = [2, 32], strides = [1, 1]} : vector<2x96xf32> to vector<2x32xf32>
    %131 = vector.extract_strided_slice %113 {offsets = [0, 64], sizes = [2, 32], strides = [1, 1]} : vector<2x96xf32> to vector<2x32xf32>
    %132 = vector.broadcast %1 : vector<1x32xf32> to vector<2x32xf32>
    %133 = arith.addf %131, %132 : vector<2x32xf32>
    %134 = arith.mulf %121, %133 : vector<2x32xf32>
    %135 = arith.addf %130, %134 : vector<2x32xf32>
    %136 = math.tanh %135 : vector<2x32xf32>
    %cst_31 = arith.constant 1.000000e+00 : f32
    %137 = vector.broadcast %cst_31 : f32 to vector<2x32xf32>
    %138 = arith.subf %137, %129 : vector<2x32xf32>
    %139 = arith.mulf %138, %136 : vector<2x32xf32>
    %140 = arith.mulf %129, %106 : vector<2x32xf32>
    %141 = arith.addf %139, %140 : vector<2x32xf32>
    %142 = arith.index_cast %110 : i32 to index
    %c0_32 = arith.constant 0 : index
    %143 = vector.load %arg13[%142, %c0_32] : memref<16x32xf32, #tpu.memory_space<vmem>>, vector<2x32xf32>
    tpu.vector_store %arg13[%142, %c0_32], %141 {strides = array<i32>} : memref<16x32xf32, #tpu.memory_space<vmem>>, vector<2x32xf32>,
    %c4_i32 = arith.constant 4 : i32
    %c2_i32_33 = arith.constant 2 : i32
    %144 = arith.muli %c4_i32, %c2_i32_33 : i32
    %145 = tpu.assume_multiple %144, 2 : i32
    %146 = arith.index_cast %145 : i32 to index
    %c0_34 = arith.constant 0 : index
    %147 = vector.load %arg0[%146, %c0_34] : memref<16x96xf32, #tpu.memory_space<vmem>>, vector<2x96xf32>
    %cst_35 = arith.constant dense<0.000000e+00> : vector<2x96xf32>
    %148 = tpu.matmul %141, %0, %cst_35 {dimension_numbers = #tpu.dot_dimension_numbers<[1], [0], [0], [1], [0, 0, 1, 1], [], []>} : vector<2x32xf32>, vector<32x96xf32>, vector<2x96xf32> -> vector<2x96xf32>
    %149 = vector.extract_strided_slice %147 {offsets = [0, 0], sizes = [2, 32], strides = [1, 1]} : vector<2x96xf32> to vector<2x32xf32>
    %150 = vector.extract_strided_slice %148 {offsets = [0, 0], sizes = [2, 32], strides = [1, 1]} : vector<2x96xf32> to vector<2x32xf32>
    %151 = arith.addf %149, %150 : vector<2x32xf32>
    %152 = arith.negf %151 : vector<2x32xf32>
    %153 = math.exp %152 : vector<2x32xf32>
    %cst_36 = arith.constant 1.000000e+00 : f32
    %154 = vector.broadcast %cst_36 : f32 to vector<2x32xf32>
    %155 = arith.addf %154, %153 : vector<2x32xf32>
    %156 = arith.divf %154, %155 : vector<2x32xf32>
    %157 = vector.extract_strided_slice %147 {offsets = [0, 32], sizes = [2, 32], strides = [1, 1]} : vector<2x96xf32> to vector<2x32xf32>
    %158 = vector.extract_strided_slice %148 {offsets = [0, 32], sizes = [2, 32], strides = [1, 1]} : vector<2x96xf32> to vector<2x32xf32>
    %159 = arith.addf %157, %158 : vector<2x32xf32>
    %160 = arith.negf %159 : vector<2x32xf32>
    %161 = math.exp %160 : vector<2x32xf32>
    %cst_37 = arith.constant 1.000000e+00 : f32
    %162 = vector.broadcast %cst_37 : f32 to vector<2x32xf32>
    %163 = arith.addf %162, %161 : vector<2x32xf32>
    %164 = arith.divf %162, %163 : vector<2x32xf32>
    %165 = vector.extract_strided_slice %147 {offsets = [0, 64], sizes = [2, 32], strides = [1, 1]} : vector<2x96xf32> to vector<2x32xf32>
    %166 = vector.extract_strided_slice %148 {offsets = [0, 64], sizes = [2, 32], strides = [1, 1]} : vector<2x96xf32> to vector<2x32xf32>
    %167 = vector.broadcast %1 : vector<1x32xf32> to vector<2x32xf32>
    %168 = arith.addf %166, %167 : vector<2x32xf32>
    %169 = arith.mulf %156, %168 : vector<2x32xf32>
    %170 = arith.addf %165, %169 : vector<2x32xf32>
    %171 = math.tanh %170 : vector<2x32xf32>
    %cst_38 = arith.constant 1.000000e+00 : f32
    %172 = vector.broadcast %cst_38 : f32 to vector<2x32xf32>
    %173 = arith.subf %172, %164 : vector<2x32xf32>
    %174 = arith.mulf %173, %171 : vector<2x32xf32>
    %175 = arith.mulf %164, %141 : vector<2x32xf32>
    %176 = arith.addf %174, %175 : vector<2x32xf32>
    %177 = arith.index_cast %145 : i32 to index
    %c0_39 = arith.constant 0 : index
    %178 = vector.load %arg13[%177, %c0_39] : memref<16x32xf32, #tpu.memory_space<vmem>>, vector<2x32xf32>
    tpu.vector_store %arg13[%177, %c0_39], %176 {strides = array<i32>} : memref<16x32xf32, #tpu.memory_space<vmem>>, vector<2x32xf32>,
    %c5_i32 = arith.constant 5 : i32
    %c2_i32_40 = arith.constant 2 : i32
    %179 = arith.muli %c5_i32, %c2_i32_40 : i32
    %180 = tpu.assume_multiple %179, 2 : i32
    %181 = arith.index_cast %180 : i32 to index
    %c0_41 = arith.constant 0 : index
    %182 = vector.load %arg0[%181, %c0_41] : memref<16x96xf32, #tpu.memory_space<vmem>>, vector<2x96xf32>
    %cst_42 = arith.constant dense<0.000000e+00> : vector<2x96xf32>
    %183 = tpu.matmul %176, %0, %cst_42 {dimension_numbers = #tpu.dot_dimension_numbers<[1], [0], [0], [1], [0, 0, 1, 1], [], []>} : vector<2x32xf32>, vector<32x96xf32>, vector<2x96xf32> -> vector<2x96xf32>
    %184 = vector.extract_strided_slice %182 {offsets = [0, 0], sizes = [2, 32], strides = [1, 1]} : vector<2x96xf32> to vector<2x32xf32>
    %185 = vector.extract_strided_slice %183 {offsets = [0, 0], sizes = [2, 32], strides = [1, 1]} : vector<2x96xf32> to vector<2x32xf32>
    %186 = arith.addf %184, %185 : vector<2x32xf32>
    %187 = arith.negf %186 : vector<2x32xf32>
    %188 = math.exp %187 : vector<2x32xf32>
    %cst_43 = arith.constant 1.000000e+00 : f32
    %189 = vector.broadcast %cst_43 : f32 to vector<2x32xf32>
    %190 = arith.addf %189, %188 : vector<2x32xf32>
    %191 = arith.divf %189, %190 : vector<2x32xf32>
    %192 = vector.extract_strided_slice %182 {offsets = [0, 32], sizes = [2, 32], strides = [1, 1]} : vector<2x96xf32> to vector<2x32xf32>
    %193 = vector.extract_strided_slice %183 {offsets = [0, 32], sizes = [2, 32], strides = [1, 1]} : vector<2x96xf32> to vector<2x32xf32>
    %194 = arith.addf %192, %193 : vector<2x32xf32>
    %195 = arith.negf %194 : vector<2x32xf32>
    %196 = math.exp %195 : vector<2x32xf32>
    %cst_44 = arith.constant 1.000000e+00 : f32
    %197 = vector.broadcast %cst_44 : f32 to vector<2x32xf32>
    %198 = arith.addf %197, %196 : vector<2x32xf32>
    %199 = arith.divf %197, %198 : vector<2x32xf32>
    %200 = vector.extract_strided_slice %182 {offsets = [0, 64], sizes = [2, 32], strides = [1, 1]} : vector<2x96xf32> to vector<2x32xf32>
    %201 = vector.extract_strided_slice %183 {offsets = [0, 64], sizes = [2, 32], strides = [1, 1]} : vector<2x96xf32> to vector<2x32xf32>
    %202 = vector.broadcast %1 : vector<1x32xf32> to vector<2x32xf32>
    %203 = arith.addf %201, %202 : vector<2x32xf32>
    %204 = arith.mulf %191, %203 : vector<2x32xf32>
    %205 = arith.addf %200, %204 : vector<2x32xf32>
    %206 = math.tanh %205 : vector<2x32xf32>
    %cst_45 = arith.constant 1.000000e+00 : f32
    %207 = vector.broadcast %cst_45 : f32 to vector<2x32xf32>
    %208 = arith.subf %207, %199 : vector<2x32xf32>
    %209 = arith.mulf %208, %206 : vector<2x32xf32>
    %210 = arith.mulf %199, %176 : vector<2x32xf32>
    %211 = arith.addf %209, %210 : vector<2x32xf32>
    %212 = arith.index_cast %180 : i32 to index
    %c0_46 = arith.constant 0 : index
    %213 = vector.load %arg13[%212, %c0_46] : memref<16x32xf32, #tpu.memory_space<vmem>>, vector<2x32xf32>
    tpu.vector_store %arg13[%212, %c0_46], %211 {strides = array<i32>} : memref<16x32xf32, #tpu.memory_space<vmem>>, vector<2x32xf32>,
    %c6_i32 = arith.constant 6 : i32
    %c2_i32_47 = arith.constant 2 : i32
    %214 = arith.muli %c6_i32, %c2_i32_47 : i32
    %215 = tpu.assume_multiple %214, 2 : i32
    %216 = arith.index_cast %215 : i32 to index
    %c0_48 = arith.constant 0 : index
    %217 = vector.load %arg0[%216, %c0_48] : memref<16x96xf32, #tpu.memory_space<vmem>>, vector<2x96xf32>
    %cst_49 = arith.constant dense<0.000000e+00> : vector<2x96xf32>
    %218 = tpu.matmul %211, %0, %cst_49 {dimension_numbers = #tpu.dot_dimension_numbers<[1], [0], [0], [1], [0, 0, 1, 1], [], []>} : vector<2x32xf32>, vector<32x96xf32>, vector<2x96xf32> -> vector<2x96xf32>
    %219 = vector.extract_strided_slice %217 {offsets = [0, 0], sizes = [2, 32], strides = [1, 1]} : vector<2x96xf32> to vector<2x32xf32>
    %220 = vector.extract_strided_slice %218 {offsets = [0, 0], sizes = [2, 32], strides = [1, 1]} : vector<2x96xf32> to vector<2x32xf32>
    %221 = arith.addf %219, %220 : vector<2x32xf32>
    %222 = arith.negf %221 : vector<2x32xf32>
    %223 = math.exp %222 : vector<2x32xf32>
    %cst_50 = arith.constant 1.000000e+00 : f32
    %224 = vector.broadcast %cst_50 : f32 to vector<2x32xf32>
    %225 = arith.addf %224, %223 : vector<2x32xf32>
    %226 = arith.divf %224, %225 : vector<2x32xf32>
    %227 = vector.extract_strided_slice %217 {offsets = [0, 32], sizes = [2, 32], strides = [1, 1]} : vector<2x96xf32> to vector<2x32xf32>
    %228 = vector.extract_strided_slice %218 {offsets = [0, 32], sizes = [2, 32], strides = [1, 1]} : vector<2x96xf32> to vector<2x32xf32>
    %229 = arith.addf %227, %228 : vector<2x32xf32>
    %230 = arith.negf %229 : vector<2x32xf32>
    %231 = math.exp %230 : vector<2x32xf32>
    %cst_51 = arith.constant 1.000000e+00 : f32
    %232 = vector.broadcast %cst_51 : f32 to vector<2x32xf32>
    %233 = arith.addf %232, %231 : vector<2x32xf32>
    %234 = arith.divf %232, %233 : vector<2x32xf32>
    %235 = vector.extract_strided_slice %217 {offsets = [0, 64], sizes = [2, 32], strides = [1, 1]} : vector<2x96xf32> to vector<2x32xf32>
    %236 = vector.extract_strided_slice %218 {offsets = [0, 64], sizes = [2, 32], strides = [1, 1]} : vector<2x96xf32> to vector<2x32xf32>
    %237 = vector.broadcast %1 : vector<1x32xf32> to vector<2x32xf32>
    %238 = arith.addf %236, %237 : vector<2x32xf32>
    %239 = arith.mulf %226, %238 : vector<2x32xf32>
    %240 = arith.addf %235, %239 : vector<2x32xf32>
    %241 = math.tanh %240 : vector<2x32xf32>
    %cst_52 = arith.constant 1.000000e+00 : f32
    %242 = vector.broadcast %cst_52 : f32 to vector<2x32xf32>
    %243 = arith.subf %242, %234 : vector<2x32xf32>
    %244 = arith.mulf %243, %241 : vector<2x32xf32>
    %245 = arith.mulf %234, %211 : vector<2x32xf32>
    %246 = arith.addf %244, %245 : vector<2x32xf32>
    %247 = arith.index_cast %215 : i32 to index
    %c0_53 = arith.constant 0 : index
    %248 = vector.load %arg13[%247, %c0_53] : memref<16x32xf32, #tpu.memory_space<vmem>>, vector<2x32xf32>
    tpu.vector_store %arg13[%247, %c0_53], %246 {strides = array<i32>} : memref<16x32xf32, #tpu.memory_space<vmem>>, vector<2x32xf32>,
    %c7_i32 = arith.constant 7 : i32
    %c2_i32_54 = arith.constant 2 : i32
    %249 = arith.muli %c7_i32, %c2_i32_54 : i32
    %250 = tpu.assume_multiple %249, 2 : i32
    %251 = arith.index_cast %250 : i32 to index
    %c0_55 = arith.constant 0 : index
    %252 = vector.load %arg0[%251, %c0_55] : memref<16x96xf32, #tpu.memory_space<vmem>>, vector<2x96xf32>
    %cst_56 = arith.constant dense<0.000000e+00> : vector<2x96xf32>
    %253 = tpu.matmul %246, %0, %cst_56 {dimension_numbers = #tpu.dot_dimension_numbers<[1], [0], [0], [1], [0, 0, 1, 1], [], []>} : vector<2x32xf32>, vector<32x96xf32>, vector<2x96xf32> -> vector<2x96xf32>
    %254 = vector.extract_strided_slice %252 {offsets = [0, 0], sizes = [2, 32], strides = [1, 1]} : vector<2x96xf32> to vector<2x32xf32>
    %255 = vector.extract_strided_slice %253 {offsets = [0, 0], sizes = [2, 32], strides = [1, 1]} : vector<2x96xf32> to vector<2x32xf32>
    %256 = arith.addf %254, %255 : vector<2x32xf32>
    %257 = arith.negf %256 : vector<2x32xf32>
    %258 = math.exp %257 : vector<2x32xf32>
    %cst_57 = arith.constant 1.000000e+00 : f32
    %259 = vector.broadcast %cst_57 : f32 to vector<2x32xf32>
    %260 = arith.addf %259, %258 : vector<2x32xf32>
    %261 = arith.divf %259, %260 : vector<2x32xf32>
    %262 = vector.extract_strided_slice %252 {offsets = [0, 32], sizes = [2, 32], strides = [1, 1]} : vector<2x96xf32> to vector<2x32xf32>
    %263 = vector.extract_strided_slice %253 {offsets = [0, 32], sizes = [2, 32], strides = [1, 1]} : vector<2x96xf32> to vector<2x32xf32>
    %264 = arith.addf %262, %263 : vector<2x32xf32>
    %265 = arith.negf %264 : vector<2x32xf32>
    %266 = math.exp %265 : vector<2x32xf32>
    %cst_58 = arith.constant 1.000000e+00 : f32
    %267 = vector.broadcast %cst_58 : f32 to vector<2x32xf32>
    %268 = arith.addf %267, %266 : vector<2x32xf32>
    %269 = arith.divf %267, %268 : vector<2x32xf32>
    %270 = vector.extract_strided_slice %252 {offsets = [0, 64], sizes = [2, 32], strides = [1, 1]} : vector<2x96xf32> to vector<2x32xf32>
    %271 = vector.extract_strided_slice %253 {offsets = [0, 64], sizes = [2, 32], strides = [1, 1]} : vector<2x96xf32> to vector<2x32xf32>
    %272 = vector.broadcast %1 : vector<1x32xf32> to vector<2x32xf32>
    %273 = arith.addf %271, %272 : vector<2x32xf32>
    %274 = arith.mulf %261, %273 : vector<2x32xf32>
    %275 = arith.addf %270, %274 : vector<2x32xf32>
    %276 = math.tanh %275 : vector<2x32xf32>
    %cst_59 = arith.constant 1.000000e+00 : f32
    %277 = vector.broadcast %cst_59 : f32 to vector<2x32xf32>
    %278 = arith.subf %277, %269 : vector<2x32xf32>
    %279 = arith.mulf %278, %276 : vector<2x32xf32>
    %280 = arith.mulf %269, %246 : vector<2x32xf32>
    %281 = arith.addf %279, %280 : vector<2x32xf32>
    %282 = arith.index_cast %250 : i32 to index
    %c0_60 = arith.constant 0 : index
    %283 = vector.load %arg13[%282, %c0_60] : memref<16x32xf32, #tpu.memory_space<vmem>>, vector<2x32xf32>
    tpu.vector_store %arg13[%282, %c0_60], %281 {strides = array<i32>} : memref<16x32xf32, #tpu.memory_space<vmem>>, vector<2x32xf32>,
    %c8_i32 = arith.constant 8 : i32
    %c0_61 = arith.constant 0 : index
    %c0_62 = arith.constant 0 : index
    %c0_63 = arith.constant 0 : index
    %284 = vector.load %arg11[%c0_61, %c0_62, %c0_63] : memref<2x2x32xf32, #tpu.memory_space<vmem>>, vector<1x2x32xf32>
    %285 = vector.shape_cast %284 : vector<1x2x32xf32> to vector<2x32xf32>
    %286 = vector.shape_cast %281 : vector<2x32xf32> to vector<1x2x32xf32>
    tpu.vector_store %arg11[%c0_61, %c0_62, %c0_63], %286 {strides = array<i32>} : memref<2x2x32xf32, #tpu.memory_space<vmem>>, vector<1x2x32xf32>,
    %c0_64 = arith.constant 0 : index
    %c0_65 = arith.constant 0 : index
    %287 = vector.load %arg6[%c0_64, %c0_65] : memref<32x96xf32, #tpu.memory_space<vmem>>, vector<32x96xf32>
    %c0_66 = arith.constant 0 : index
    %c0_67 = arith.constant 0 : index
    %288 = vector.load %arg7[%c0_66, %c0_67] : memref<1x32xf32, #tpu.memory_space<vmem>>, vector<1x32xf32>
    %c0_68 = arith.constant 0 : index
    %c0_69 = arith.constant 0 : index
    %289 = vector.load %arg13[%c0_68, %c0_69] : memref<16x32xf32, #tpu.memory_space<vmem>>, vector<16x32xf32>
    %c0_70 = arith.constant 0 : index
    %c0_71 = arith.constant 0 : index
    %290 = vector.load %arg4[%c0_70, %c0_71] : memref<32x96xf32, #tpu.memory_space<vmem>>, vector<32x96xf32>
    %cst_72 = arith.constant dense<0.000000e+00> : vector<16x96xf32>
    %291 = tpu.matmul %289, %290, %cst_72 {dimension_numbers = #tpu.dot_dimension_numbers<[1], [0], [0], [1], [0, 0, 1, 1], [], []>} : vector<16x32xf32>, vector<32x96xf32>, vector<16x96xf32> -> vector<16x96xf32>
    %c0_73 = arith.constant 0 : index
    %c0_74 = arith.constant 0 : index
    %292 = vector.load %arg5[%c0_73, %c0_74] : memref<1x96xf32, #tpu.memory_space<vmem>>, vector<1x96xf32>
    %293 = vector.broadcast %292 : vector<1x96xf32> to vector<16x96xf32>
    %294 = arith.addf %291, %293 : vector<16x96xf32>
    %c0_75 = arith.constant 0 : index
    %c0_76 = arith.constant 0 : index
    %295 = vector.load %arg12[%c0_75, %c0_76] : memref<16x96xf32, #tpu.memory_space<vmem>>, vector<16x96xf32>
    tpu.vector_store %arg12[%c0_75, %c0_76], %294 {strides = array<i32>} : memref<16x96xf32, #tpu.memory_space<vmem>>, vector<16x96xf32>,
    %c1 = arith.constant 1 : index
    %c0_77 = arith.constant 0 : index
    %c0_78 = arith.constant 0 : index
    %296 = vector.load %arg1[%c1, %c0_77, %c0_78] : memref<2x2x32xf32, #tpu.memory_space<vmem>>, vector<1x2x32xf32>
    %297 = vector.shape_cast %296 : vector<1x2x32xf32> to vector<2x32xf32>
    %c0_i32_79 = arith.constant 0 : i32
    %c2_i32_80 = arith.constant 2 : i32
    %298 = arith.muli %c0_i32_79, %c2_i32_80 : i32
    %299 = tpu.assume_multiple %298, 2 : i32
    %300 = arith.index_cast %299 : i32 to index
    %c0_81 = arith.constant 0 : index
    %301 = vector.load %arg12[%300, %c0_81] : memref<16x96xf32, #tpu.memory_space<vmem>>, vector<2x96xf32>
    %cst_82 = arith.constant dense<0.000000e+00> : vector<2x96xf32>
    %302 = tpu.matmul %297, %287, %cst_82 {dimension_numbers = #tpu.dot_dimension_numbers<[1], [0], [0], [1], [0, 0, 1, 1], [], []>} : vector<2x32xf32>, vector<32x96xf32>, vector<2x96xf32> -> vector<2x96xf32>
    %303 = vector.extract_strided_slice %301 {offsets = [0, 0], sizes = [2, 32], strides = [1, 1]} : vector<2x96xf32> to vector<2x32xf32>
    %304 = vector.extract_strided_slice %302 {offsets = [0, 0], sizes = [2, 32], strides = [1, 1]} : vector<2x96xf32> to vector<2x32xf32>
    %305 = arith.addf %303, %304 : vector<2x32xf32>
    %306 = arith.negf %305 : vector<2x32xf32>
    %307 = math.exp %306 : vector<2x32xf32>
    %cst_83 = arith.constant 1.000000e+00 : f32
    %308 = vector.broadcast %cst_83 : f32 to vector<2x32xf32>
    %309 = arith.addf %308, %307 : vector<2x32xf32>
    %310 = arith.divf %308, %309 : vector<2x32xf32>
    %311 = vector.extract_strided_slice %301 {offsets = [0, 32], sizes = [2, 32], strides = [1, 1]} : vector<2x96xf32> to vector<2x32xf32>
    %312 = vector.extract_strided_slice %302 {offsets = [0, 32], sizes = [2, 32], strides = [1, 1]} : vector<2x96xf32> to vector<2x32xf32>
    %313 = arith.addf %311, %312 : vector<2x32xf32>
    %314 = arith.negf %313 : vector<2x32xf32>
    %315 = math.exp %314 : vector<2x32xf32>
    %cst_84 = arith.constant 1.000000e+00 : f32
    %316 = vector.broadcast %cst_84 : f32 to vector<2x32xf32>
    %317 = arith.addf %316, %315 : vector<2x32xf32>
    %318 = arith.divf %316, %317 : vector<2x32xf32>
    %319 = vector.extract_strided_slice %301 {offsets = [0, 64], sizes = [2, 32], strides = [1, 1]} : vector<2x96xf32> to vector<2x32xf32>
    %320 = vector.extract_strided_slice %302 {offsets = [0, 64], sizes = [2, 32], strides = [1, 1]} : vector<2x96xf32> to vector<2x32xf32>
    %321 = vector.broadcast %288 : vector<1x32xf32> to vector<2x32xf32>
    %322 = arith.addf %320, %321 : vector<2x32xf32>
    %323 = arith.mulf %310, %322 : vector<2x32xf32>
    %324 = arith.addf %319, %323 : vector<2x32xf32>
    %325 = math.tanh %324 : vector<2x32xf32>
    %cst_85 = arith.constant 1.000000e+00 : f32
    %326 = vector.broadcast %cst_85 : f32 to vector<2x32xf32>
    %327 = arith.subf %326, %318 : vector<2x32xf32>
    %328 = arith.mulf %327, %325 : vector<2x32xf32>
    %329 = arith.mulf %318, %297 : vector<2x32xf32>
    %330 = arith.addf %328, %329 : vector<2x32xf32>
    %c1_i32_86 = arith.constant 1 : i32
    %c2_i32_87 = arith.constant 2 : i32
    %331 = arith.muli %c1_i32_86, %c2_i32_87 : i32
    %332 = tpu.assume_multiple %331, 2 : i32
    %333 = arith.index_cast %332 : i32 to index
    %c0_88 = arith.constant 0 : index
    %334 = vector.load %arg12[%333, %c0_88] : memref<16x96xf32, #tpu.memory_space<vmem>>, vector<2x96xf32>
    %cst_89 = arith.constant dense<0.000000e+00> : vector<2x96xf32>
    %335 = tpu.matmul %330, %287, %cst_89 {dimension_numbers = #tpu.dot_dimension_numbers<[1], [0], [0], [1], [0, 0, 1, 1], [], []>} : vector<2x32xf32>, vector<32x96xf32>, vector<2x96xf32> -> vector<2x96xf32>
    %336 = vector.extract_strided_slice %334 {offsets = [0, 0], sizes = [2, 32], strides = [1, 1]} : vector<2x96xf32> to vector<2x32xf32>
    %337 = vector.extract_strided_slice %335 {offsets = [0, 0], sizes = [2, 32], strides = [1, 1]} : vector<2x96xf32> to vector<2x32xf32>
    %338 = arith.addf %336, %337 : vector<2x32xf32>
    %339 = arith.negf %338 : vector<2x32xf32>
    %340 = math.exp %339 : vector<2x32xf32>
    %cst_90 = arith.constant 1.000000e+00 : f32
    %341 = vector.broadcast %cst_90 : f32 to vector<2x32xf32>
    %342 = arith.addf %341, %340 : vector<2x32xf32>
    %343 = arith.divf %341, %342 : vector<2x32xf32>
    %344 = vector.extract_strided_slice %334 {offsets = [0, 32], sizes = [2, 32], strides = [1, 1]} : vector<2x96xf32> to vector<2x32xf32>
    %345 = vector.extract_strided_slice %335 {offsets = [0, 32], sizes = [2, 32], strides = [1, 1]} : vector<2x96xf32> to vector<2x32xf32>
    %346 = arith.addf %344, %345 : vector<2x32xf32>
    %347 = arith.negf %346 : vector<2x32xf32>
    %348 = math.exp %347 : vector<2x32xf32>
    %cst_91 = arith.constant 1.000000e+00 : f32
    %349 = vector.broadcast %cst_91 : f32 to vector<2x32xf32>
    %350 = arith.addf %349, %348 : vector<2x32xf32>
    %351 = arith.divf %349, %350 : vector<2x32xf32>
    %352 = vector.extract_strided_slice %334 {offsets = [0, 64], sizes = [2, 32], strides = [1, 1]} : vector<2x96xf32> to vector<2x32xf32>
    %353 = vector.extract_strided_slice %335 {offsets = [0, 64], sizes = [2, 32], strides = [1, 1]} : vector<2x96xf32> to vector<2x32xf32>
    %354 = vector.broadcast %288 : vector<1x32xf32> to vector<2x32xf32>
    %355 = arith.addf %353, %354 : vector<2x32xf32>
    %356 = arith.mulf %343, %355 : vector<2x32xf32>
    %357 = arith.addf %352, %356 : vector<2x32xf32>
    %358 = math.tanh %357 : vector<2x32xf32>
    %cst_92 = arith.constant 1.000000e+00 : f32
    %359 = vector.broadcast %cst_92 : f32 to vector<2x32xf32>
    %360 = arith.subf %359, %351 : vector<2x32xf32>
    %361 = arith.mulf %360, %358 : vector<2x32xf32>
    %362 = arith.mulf %351, %330 : vector<2x32xf32>
    %363 = arith.addf %361, %362 : vector<2x32xf32>
    %c2_i32_93 = arith.constant 2 : i32
    %c2_i32_94 = arith.constant 2 : i32
    %364 = arith.muli %c2_i32_93, %c2_i32_94 : i32
    %365 = tpu.assume_multiple %364, 2 : i32
    %366 = arith.index_cast %365 : i32 to index
    %c0_95 = arith.constant 0 : index
    %367 = vector.load %arg12[%366, %c0_95] : memref<16x96xf32, #tpu.memory_space<vmem>>, vector<2x96xf32>
    %cst_96 = arith.constant dense<0.000000e+00> : vector<2x96xf32>
    %368 = tpu.matmul %363, %287, %cst_96 {dimension_numbers = #tpu.dot_dimension_numbers<[1], [0], [0], [1], [0, 0, 1, 1], [], []>} : vector<2x32xf32>, vector<32x96xf32>, vector<2x96xf32> -> vector<2x96xf32>
    %369 = vector.extract_strided_slice %367 {offsets = [0, 0], sizes = [2, 32], strides = [1, 1]} : vector<2x96xf32> to vector<2x32xf32>
    %370 = vector.extract_strided_slice %368 {offsets = [0, 0], sizes = [2, 32], strides = [1, 1]} : vector<2x96xf32> to vector<2x32xf32>
    %371 = arith.addf %369, %370 : vector<2x32xf32>
    %372 = arith.negf %371 : vector<2x32xf32>
    %373 = math.exp %372 : vector<2x32xf32>
    %cst_97 = arith.constant 1.000000e+00 : f32
    %374 = vector.broadcast %cst_97 : f32 to vector<2x32xf32>
    %375 = arith.addf %374, %373 : vector<2x32xf32>
    %376 = arith.divf %374, %375 : vector<2x32xf32>
    %377 = vector.extract_strided_slice %367 {offsets = [0, 32], sizes = [2, 32], strides = [1, 1]} : vector<2x96xf32> to vector<2x32xf32>
    %378 = vector.extract_strided_slice %368 {offsets = [0, 32], sizes = [2, 32], strides = [1, 1]} : vector<2x96xf32> to vector<2x32xf32>
    %379 = arith.addf %377, %378 : vector<2x32xf32>
    %380 = arith.negf %379 : vector<2x32xf32>
    %381 = math.exp %380 : vector<2x32xf32>
    %cst_98 = arith.constant 1.000000e+00 : f32
    %382 = vector.broadcast %cst_98 : f32 to vector<2x32xf32>
    %383 = arith.addf %382, %381 : vector<2x32xf32>
    %384 = arith.divf %382, %383 : vector<2x32xf32>
    %385 = vector.extract_strided_slice %367 {offsets = [0, 64], sizes = [2, 32], strides = [1, 1]} : vector<2x96xf32> to vector<2x32xf32>
    %386 = vector.extract_strided_slice %368 {offsets = [0, 64], sizes = [2, 32], strides = [1, 1]} : vector<2x96xf32> to vector<2x32xf32>
    %387 = vector.broadcast %288 : vector<1x32xf32> to vector<2x32xf32>
    %388 = arith.addf %386, %387 : vector<2x32xf32>
    %389 = arith.mulf %376, %388 : vector<2x32xf32>
    %390 = arith.addf %385, %389 : vector<2x32xf32>
    %391 = math.tanh %390 : vector<2x32xf32>
    %cst_99 = arith.constant 1.000000e+00 : f32
    %392 = vector.broadcast %cst_99 : f32 to vector<2x32xf32>
    %393 = arith.subf %392, %384 : vector<2x32xf32>
    %394 = arith.mulf %393, %391 : vector<2x32xf32>
    %395 = arith.mulf %384, %363 : vector<2x32xf32>
    %396 = arith.addf %394, %395 : vector<2x32xf32>
    %c3_i32_100 = arith.constant 3 : i32
    %c2_i32_101 = arith.constant 2 : i32
    %397 = arith.muli %c3_i32_100, %c2_i32_101 : i32
    %398 = tpu.assume_multiple %397, 2 : i32
    %399 = arith.index_cast %398 : i32 to index
    %c0_102 = arith.constant 0 : index
    %400 = vector.load %arg12[%399, %c0_102] : memref<16x96xf32, #tpu.memory_space<vmem>>, vector<2x96xf32>
    %cst_103 = arith.constant dense<0.000000e+00> : vector<2x96xf32>
    %401 = tpu.matmul %396, %287, %cst_103 {dimension_numbers = #tpu.dot_dimension_numbers<[1], [0], [0], [1], [0, 0, 1, 1], [], []>} : vector<2x32xf32>, vector<32x96xf32>, vector<2x96xf32> -> vector<2x96xf32>
    %402 = vector.extract_strided_slice %400 {offsets = [0, 0], sizes = [2, 32], strides = [1, 1]} : vector<2x96xf32> to vector<2x32xf32>
    %403 = vector.extract_strided_slice %401 {offsets = [0, 0], sizes = [2, 32], strides = [1, 1]} : vector<2x96xf32> to vector<2x32xf32>
    %404 = arith.addf %402, %403 : vector<2x32xf32>
    %405 = arith.negf %404 : vector<2x32xf32>
    %406 = math.exp %405 : vector<2x32xf32>
    %cst_104 = arith.constant 1.000000e+00 : f32
    %407 = vector.broadcast %cst_104 : f32 to vector<2x32xf32>
    %408 = arith.addf %407, %406 : vector<2x32xf32>
    %409 = arith.divf %407, %408 : vector<2x32xf32>
    %410 = vector.extract_strided_slice %400 {offsets = [0, 32], sizes = [2, 32], strides = [1, 1]} : vector<2x96xf32> to vector<2x32xf32>
    %411 = vector.extract_strided_slice %401 {offsets = [0, 32], sizes = [2, 32], strides = [1, 1]} : vector<2x96xf32> to vector<2x32xf32>
    %412 = arith.addf %410, %411 : vector<2x32xf32>
    %413 = arith.negf %412 : vector<2x32xf32>
    %414 = math.exp %413 : vector<2x32xf32>
    %cst_105 = arith.constant 1.000000e+00 : f32
    %415 = vector.broadcast %cst_105 : f32 to vector<2x32xf32>
    %416 = arith.addf %415, %414 : vector<2x32xf32>
    %417 = arith.divf %415, %416 : vector<2x32xf32>
    %418 = vector.extract_strided_slice %400 {offsets = [0, 64], sizes = [2, 32], strides = [1, 1]} : vector<2x96xf32> to vector<2x32xf32>
    %419 = vector.extract_strided_slice %401 {offsets = [0, 64], sizes = [2, 32], strides = [1, 1]} : vector<2x96xf32> to vector<2x32xf32>
    %420 = vector.broadcast %288 : vector<1x32xf32> to vector<2x32xf32>
    %421 = arith.addf %419, %420 : vector<2x32xf32>
    %422 = arith.mulf %409, %421 : vector<2x32xf32>
    %423 = arith.addf %418, %422 : vector<2x32xf32>
    %424 = math.tanh %423 : vector<2x32xf32>
    %cst_106 = arith.constant 1.000000e+00 : f32
    %425 = vector.broadcast %cst_106 : f32 to vector<2x32xf32>
    %426 = arith.subf %425, %417 : vector<2x32xf32>
    %427 = arith.mulf %426, %424 : vector<2x32xf32>
    %428 = arith.mulf %417, %396 : vector<2x32xf32>
    %429 = arith.addf %427, %428 : vector<2x32xf32>
    %c4_i32_107 = arith.constant 4 : i32
    %c2_i32_108 = arith.constant 2 : i32
    %430 = arith.muli %c4_i32_107, %c2_i32_108 : i32
    %431 = tpu.assume_multiple %430, 2 : i32
    %432 = arith.index_cast %431 : i32 to index
    %c0_109 = arith.constant 0 : index
    %433 = vector.load %arg12[%432, %c0_109] : memref<16x96xf32, #tpu.memory_space<vmem>>, vector<2x96xf32>
    %cst_110 = arith.constant dense<0.000000e+00> : vector<2x96xf32>
    %434 = tpu.matmul %429, %287, %cst_110 {dimension_numbers = #tpu.dot_dimension_numbers<[1], [0], [0], [1], [0, 0, 1, 1], [], []>} : vector<2x32xf32>, vector<32x96xf32>, vector<2x96xf32> -> vector<2x96xf32>
    %435 = vector.extract_strided_slice %433 {offsets = [0, 0], sizes = [2, 32], strides = [1, 1]} : vector<2x96xf32> to vector<2x32xf32>
    %436 = vector.extract_strided_slice %434 {offsets = [0, 0], sizes = [2, 32], strides = [1, 1]} : vector<2x96xf32> to vector<2x32xf32>
    %437 = arith.addf %435, %436 : vector<2x32xf32>
    %438 = arith.negf %437 : vector<2x32xf32>
    %439 = math.exp %438 : vector<2x32xf32>
    %cst_111 = arith.constant 1.000000e+00 : f32
    %440 = vector.broadcast %cst_111 : f32 to vector<2x32xf32>
    %441 = arith.addf %440, %439 : vector<2x32xf32>
    %442 = arith.divf %440, %441 : vector<2x32xf32>
    %443 = vector.extract_strided_slice %433 {offsets = [0, 32], sizes = [2, 32], strides = [1, 1]} : vector<2x96xf32> to vector<2x32xf32>
    %444 = vector.extract_strided_slice %434 {offsets = [0, 32], sizes = [2, 32], strides = [1, 1]} : vector<2x96xf32> to vector<2x32xf32>
    %445 = arith.addf %443, %444 : vector<2x32xf32>
    %446 = arith.negf %445 : vector<2x32xf32>
    %447 = math.exp %446 : vector<2x32xf32>
    %cst_112 = arith.constant 1.000000e+00 : f32
    %448 = vector.broadcast %cst_112 : f32 to vector<2x32xf32>
    %449 = arith.addf %448, %447 : vector<2x32xf32>
    %450 = arith.divf %448, %449 : vector<2x32xf32>
    %451 = vector.extract_strided_slice %433 {offsets = [0, 64], sizes = [2, 32], strides = [1, 1]} : vector<2x96xf32> to vector<2x32xf32>
    %452 = vector.extract_strided_slice %434 {offsets = [0, 64], sizes = [2, 32], strides = [1, 1]} : vector<2x96xf32> to vector<2x32xf32>
    %453 = vector.broadcast %288 : vector<1x32xf32> to vector<2x32xf32>
    %454 = arith.addf %452, %453 : vector<2x32xf32>
    %455 = arith.mulf %442, %454 : vector<2x32xf32>
    %456 = arith.addf %451, %455 : vector<2x32xf32>
    %457 = math.tanh %456 : vector<2x32xf32>
    %cst_113 = arith.constant 1.000000e+00 : f32
    %458 = vector.broadcast %cst_113 : f32 to vector<2x32xf32>
    %459 = arith.subf %458, %450 : vector<2x32xf32>
    %460 = arith.mulf %459, %457 : vector<2x32xf32>
    %461 = arith.mulf %450, %429 : vector<2x32xf32>
    %462 = arith.addf %460, %461 : vector<2x32xf32>
    %c5_i32_114 = arith.constant 5 : i32
    %c2_i32_115 = arith.constant 2 : i32
    %463 = arith.muli %c5_i32_114, %c2_i32_115 : i32
    %464 = tpu.assume_multiple %463, 2 : i32
    %465 = arith.index_cast %464 : i32 to index
    %c0_116 = arith.constant 0 : index
    %466 = vector.load %arg12[%465, %c0_116] : memref<16x96xf32, #tpu.memory_space<vmem>>, vector<2x96xf32>
    %cst_117 = arith.constant dense<0.000000e+00> : vector<2x96xf32>
    %467 = tpu.matmul %462, %287, %cst_117 {dimension_numbers = #tpu.dot_dimension_numbers<[1], [0], [0], [1], [0, 0, 1, 1], [], []>} : vector<2x32xf32>, vector<32x96xf32>, vector<2x96xf32> -> vector<2x96xf32>
    %468 = vector.extract_strided_slice %466 {offsets = [0, 0], sizes = [2, 32], strides = [1, 1]} : vector<2x96xf32> to vector<2x32xf32>
    %469 = vector.extract_strided_slice %467 {offsets = [0, 0], sizes = [2, 32], strides = [1, 1]} : vector<2x96xf32> to vector<2x32xf32>
    %470 = arith.addf %468, %469 : vector<2x32xf32>
    %471 = arith.negf %470 : vector<2x32xf32>
    %472 = math.exp %471 : vector<2x32xf32>
    %cst_118 = arith.constant 1.000000e+00 : f32
    %473 = vector.broadcast %cst_118 : f32 to vector<2x32xf32>
    %474 = arith.addf %473, %472 : vector<2x32xf32>
    %475 = arith.divf %473, %474 : vector<2x32xf32>
    %476 = vector.extract_strided_slice %466 {offsets = [0, 32], sizes = [2, 32], strides = [1, 1]} : vector<2x96xf32> to vector<2x32xf32>
    %477 = vector.extract_strided_slice %467 {offsets = [0, 32], sizes = [2, 32], strides = [1, 1]} : vector<2x96xf32> to vector<2x32xf32>
    %478 = arith.addf %476, %477 : vector<2x32xf32>
    %479 = arith.negf %478 : vector<2x32xf32>
    %480 = math.exp %479 : vector<2x32xf32>
    %cst_119 = arith.constant 1.000000e+00 : f32
    %481 = vector.broadcast %cst_119 : f32 to vector<2x32xf32>
    %482 = arith.addf %481, %480 : vector<2x32xf32>
    %483 = arith.divf %481, %482 : vector<2x32xf32>
    %484 = vector.extract_strided_slice %466 {offsets = [0, 64], sizes = [2, 32], strides = [1, 1]} : vector<2x96xf32> to vector<2x32xf32>
    %485 = vector.extract_strided_slice %467 {offsets = [0, 64], sizes = [2, 32], strides = [1, 1]} : vector<2x96xf32> to vector<2x32xf32>
    %486 = vector.broadcast %288 : vector<1x32xf32> to vector<2x32xf32>
    %487 = arith.addf %485, %486 : vector<2x32xf32>
    %488 = arith.mulf %475, %487 : vector<2x32xf32>
    %489 = arith.addf %484, %488 : vector<2x32xf32>
    %490 = math.tanh %489 : vector<2x32xf32>
    %cst_120 = arith.constant 1.000000e+00 : f32
    %491 = vector.broadcast %cst_120 : f32 to vector<2x32xf32>
    %492 = arith.subf %491, %483 : vector<2x32xf32>
    %493 = arith.mulf %492, %490 : vector<2x32xf32>
    %494 = arith.mulf %483, %462 : vector<2x32xf32>
    %495 = arith.addf %493, %494 : vector<2x32xf32>
    %c6_i32_121 = arith.constant 6 : i32
    %c2_i32_122 = arith.constant 2 : i32
    %496 = arith.muli %c6_i32_121, %c2_i32_122 : i32
    %497 = tpu.assume_multiple %496, 2 : i32
    %498 = arith.index_cast %497 : i32 to index
    %c0_123 = arith.constant 0 : index
    %499 = vector.load %arg12[%498, %c0_123] : memref<16x96xf32, #tpu.memory_space<vmem>>, vector<2x96xf32>
    %cst_124 = arith.constant dense<0.000000e+00> : vector<2x96xf32>
    %500 = tpu.matmul %495, %287, %cst_124 {dimension_numbers = #tpu.dot_dimension_numbers<[1], [0], [0], [1], [0, 0, 1, 1], [], []>} : vector<2x32xf32>, vector<32x96xf32>, vector<2x96xf32> -> vector<2x96xf32>
    %501 = vector.extract_strided_slice %499 {offsets = [0, 0], sizes = [2, 32], strides = [1, 1]} : vector<2x96xf32> to vector<2x32xf32>
    %502 = vector.extract_strided_slice %500 {offsets = [0, 0], sizes = [2, 32], strides = [1, 1]} : vector<2x96xf32> to vector<2x32xf32>
    %503 = arith.addf %501, %502 : vector<2x32xf32>
    %504 = arith.negf %503 : vector<2x32xf32>
    %505 = math.exp %504 : vector<2x32xf32>
    %cst_125 = arith.constant 1.000000e+00 : f32
    %506 = vector.broadcast %cst_125 : f32 to vector<2x32xf32>
    %507 = arith.addf %506, %505 : vector<2x32xf32>
    %508 = arith.divf %506, %507 : vector<2x32xf32>
    %509 = vector.extract_strided_slice %499 {offsets = [0, 32], sizes = [2, 32], strides = [1, 1]} : vector<2x96xf32> to vector<2x32xf32>
    %510 = vector.extract_strided_slice %500 {offsets = [0, 32], sizes = [2, 32], strides = [1, 1]} : vector<2x96xf32> to vector<2x32xf32>
    %511 = arith.addf %509, %510 : vector<2x32xf32>
    %512 = arith.negf %511 : vector<2x32xf32>
    %513 = math.exp %512 : vector<2x32xf32>
    %cst_126 = arith.constant 1.000000e+00 : f32
    %514 = vector.broadcast %cst_126 : f32 to vector<2x32xf32>
    %515 = arith.addf %514, %513 : vector<2x32xf32>
    %516 = arith.divf %514, %515 : vector<2x32xf32>
    %517 = vector.extract_strided_slice %499 {offsets = [0, 64], sizes = [2, 32], strides = [1, 1]} : vector<2x96xf32> to vector<2x32xf32>
    %518 = vector.extract_strided_slice %500 {offsets = [0, 64], sizes = [2, 32], strides = [1, 1]} : vector<2x96xf32> to vector<2x32xf32>
    %519 = vector.broadcast %288 : vector<1x32xf32> to vector<2x32xf32>
    %520 = arith.addf %518, %519 : vector<2x32xf32>
    %521 = arith.mulf %508, %520 : vector<2x32xf32>
    %522 = arith.addf %517, %521 : vector<2x32xf32>
    %523 = math.tanh %522 : vector<2x32xf32>
    %cst_127 = arith.constant 1.000000e+00 : f32
    %524 = vector.broadcast %cst_127 : f32 to vector<2x32xf32>
    %525 = arith.subf %524, %516 : vector<2x32xf32>
    %526 = arith.mulf %525, %523 : vector<2x32xf32>
    %527 = arith.mulf %516, %495 : vector<2x32xf32>
    %528 = arith.addf %526, %527 : vector<2x32xf32>
    %c7_i32_128 = arith.constant 7 : i32
    %c2_i32_129 = arith.constant 2 : i32
    %529 = arith.muli %c7_i32_128, %c2_i32_129 : i32
    %530 = tpu.assume_multiple %529, 2 : i32
    %531 = arith.index_cast %530 : i32 to index
    %c0_130 = arith.constant 0 : index
    %532 = vector.load %arg12[%531, %c0_130] : memref<16x96xf32, #tpu.memory_space<vmem>>, vector<2x96xf32>
    %cst_131 = arith.constant dense<0.000000e+00> : vector<2x96xf32>
    %533 = tpu.matmul %528, %287, %cst_131 {dimension_numbers = #tpu.dot_dimension_numbers<[1], [0], [0], [1], [0, 0, 1, 1], [], []>} : vector<2x32xf32>, vector<32x96xf32>, vector<2x96xf32> -> vector<2x96xf32>
    %534 = vector.extract_strided_slice %532 {offsets = [0, 0], sizes = [2, 32], strides = [1, 1]} : vector<2x96xf32> to vector<2x32xf32>
    %535 = vector.extract_strided_slice %533 {offsets = [0, 0], sizes = [2, 32], strides = [1, 1]} : vector<2x96xf32> to vector<2x32xf32>
    %536 = arith.addf %534, %535 : vector<2x32xf32>
    %537 = arith.negf %536 : vector<2x32xf32>
    %538 = math.exp %537 : vector<2x32xf32>
    %cst_132 = arith.constant 1.000000e+00 : f32
    %539 = vector.broadcast %cst_132 : f32 to vector<2x32xf32>
    %540 = arith.addf %539, %538 : vector<2x32xf32>
    %541 = arith.divf %539, %540 : vector<2x32xf32>
    %542 = vector.extract_strided_slice %532 {offsets = [0, 32], sizes = [2, 32], strides = [1, 1]} : vector<2x96xf32> to vector<2x32xf32>
    %543 = vector.extract_strided_slice %533 {offsets = [0, 32], sizes = [2, 32], strides = [1, 1]} : vector<2x96xf32> to vector<2x32xf32>
    %544 = arith.addf %542, %543 : vector<2x32xf32>
    %545 = arith.negf %544 : vector<2x32xf32>
    %546 = math.exp %545 : vector<2x32xf32>
    %cst_133 = arith.constant 1.000000e+00 : f32
    %547 = vector.broadcast %cst_133 : f32 to vector<2x32xf32>
    %548 = arith.addf %547, %546 : vector<2x32xf32>
    %549 = arith.divf %547, %548 : vector<2x32xf32>
    %550 = vector.extract_strided_slice %532 {offsets = [0, 64], sizes = [2, 32], strides = [1, 1]} : vector<2x96xf32> to vector<2x32xf32>
    %551 = vector.extract_strided_slice %533 {offsets = [0, 64], sizes = [2, 32], strides = [1, 1]} : vector<2x96xf32> to vector<2x32xf32>
    %552 = vector.broadcast %288 : vector<1x32xf32> to vector<2x32xf32>
    %553 = arith.addf %551, %552 : vector<2x32xf32>
    %554 = arith.mulf %541, %553 : vector<2x32xf32>
    %555 = arith.addf %550, %554 : vector<2x32xf32>
    %556 = math.tanh %555 : vector<2x32xf32>
    %cst_134 = arith.constant 1.000000e+00 : f32
    %557 = vector.broadcast %cst_134 : f32 to vector<2x32xf32>
    %558 = arith.subf %557, %549 : vector<2x32xf32>
    %559 = arith.mulf %558, %556 : vector<2x32xf32>
    %560 = arith.mulf %549, %528 : vector<2x32xf32>
    %561 = arith.addf %559, %560 : vector<2x32xf32>
    %c8_i32_135 = arith.constant 8 : i32
    %c1_136 = arith.constant 1 : index
    %c0_137 = arith.constant 0 : index
    %c0_138 = arith.constant 0 : index
    %562 = vector.load %arg11[%c1_136, %c0_137, %c0_138] : memref<2x2x32xf32, #tpu.memory_space<vmem>>, vector<1x2x32xf32>
    %563 = vector.shape_cast %562 : vector<1x2x32xf32> to vector<2x32xf32>
    %564 = vector.shape_cast %561 : vector<2x32xf32> to vector<1x2x32xf32>
    tpu.vector_store %arg11[%c1_136, %c0_137, %c0_138], %564 {strides = array<i32>} : memref<2x2x32xf32, #tpu.memory_space<vmem>>, vector<1x2x32xf32>,
    %c0_139 = arith.constant 0 : index
    %c0_140 = arith.constant 0 : index
    %565 = vector.load %arg8[%c0_139, %c0_140] : memref<32x8xf32, #tpu.memory_space<vmem>>, vector<32x8xf32>
    %cst_141 = arith.constant dense<0.000000e+00> : vector<2x8xf32>
    %566 = tpu.matmul %561, %565, %cst_141 {dimension_numbers = #tpu.dot_dimension_numbers<[1], [0], [0], [1], [0, 0, 1, 1], [], []>} : vector<2x32xf32>, vector<32x8xf32>, vector<2x8xf32> -> vector<2x8xf32>
    %c0_142 = arith.constant 0 : index
    %c0_143 = arith.constant 0 : index
    %567 = vector.load %arg9[%c0_142, %c0_143] : memref<1x8xf32, #tpu.memory_space<vmem>>, vector<1x8xf32>
    %568 = vector.broadcast %567 : vector<1x8xf32> to vector<2x8xf32>
    %569 = arith.addf %566, %568 : vector<2x8xf32>
    %c0_144 = arith.constant 0 : index
    %c0_145 = arith.constant 0 : index
    %570 = vector.load %arg10[%c0_144, %c0_145] : memref<2x8xf32, #tpu.memory_space<vmem>>, vector<2x8xf32>
    tpu.vector_store %arg10[%c0_144, %c0_145], %569 {strides = array<i32>} : memref<2x8xf32, #tpu.memory_space<vmem>>, vector<2x8xf32>,
    return
  }
}

</mosaic_0001>

<bundles_post_ra>
// kernel: gru_net_forward.1
= control target key start
LH: loop header
LB: loop body
LE: loop exit
PB: predicated region body
PF: predicated region fallthrough
CT: control target
= control target key end

     0   :  { %17 = vsyncpa [#allocation5], 0  ;;  %v2578_v3 = vmov 0.0|0.0   ;;  %vm2579_vm0 = vmmov 0   ;;  %v2580_v6 = vmov 0.0   ;;  %s2988_s0 = inlined_call_operand.vmem [shape: f32[16,96], index: 0, kind: input, shape index: {}]   ;;  %s2989_s1 = inlined_call_operand.vmem [shape: f32[2,2,32], index: 1, kind: input, shape index: {}]   ;;  %s2990_s2 = inlined_call_operand.vmem [shape: f32[32,96], index: 2, kind: input, shape index: {}]   ;;  %s2991_s3 = inlined_call_operand.vmem [shape: f32[1,32], index: 3, kind: input, shape index: {}]   ;;  %s2992_s4 = inlined_call_operand.vmem [shape: f32[32,96], index: 4, kind: input, shape index: {}]   ;;  %s2993_s5 = inlined_call_operand.vmem [shape: f32[1,96], index: 5, kind: input, shape index: {}]   ;;  %s2994_s6 = inlined_call_operand.vmem [shape: f32[32,96], index: 6, kind: input, shape index: {}]   ;;  %s2995_s7 = inlined_call_operand.vmem [shape: f32[1,32], index: 7, kind: input, shape index: {}]   ;;  %s2996_s8 = inlined_call_operand.vmem [shape: f32[32,8], index: 8, kind: input, shape index: {}]   ;;  %s2997_s9 = inlined_call_operand.vmem [shape: f32[1,8], index: 9, kind: input, shape index: {}]   ;;  %s2998_s10 = inlined_call_operand.hbm [shape: f32[2,8], index: 10, kind: output, shape index: {0}]   ;;  %s2999_s11 = inlined_call_operand.hbm [shape: f32[2,2,32], index: 11, kind: output, shape index: {1}]  }
   0x1   :  { %v39_v0 = vld [vmem:[%s2990_s2] sm:$0xff]  ;;  %v40_v1 = vld [vmem:[%s2990_s2 + $0x8] sm:$0xff]  ;;  %v41_v2 = vld [vmem:[%s2990_s2 + $0x10] sm:$0xff]  ;;  %2315 = vmatprep.subr.bf16.mxu0 %v2578_v3  ;;  %2125 = vmatprep.mubr.msk.f32.mxu0 %vm2579_vm0, %v2580_v6 }
   0x2   :  { %v2657_v4 = vpack.c.bf16 %v40_v1, %v39_v0  ;;  %v42_v5 = vld [vmem:[%s2990_s2 + $0x18] sm:$0xff]  ;;  %v1981_v7 = vld [vmem:[%s2991_s3] ss:$0 sm:$0xff]  ;;  %2321 = vmatprep.subr.bf16.mxu1 %v2578_v3  ;;  %2136 = vmatprep.mubr.msk.f32.mxu1 %vm2579_vm0, %v2580_v6 }
   0x3   :  { %18 = vsyncpa [#allocation7], 0  ;;  %v2671_v8 = vpack.c.bf16 %v42_v5, %v41_v2  ;;  %s2581_s2 = smov 64   ;;  %v44_v9 = vld [vmem:[%s2989_s1] sm:$0x3]  ;;  %vm46_vm1 = vcmask 261120  }
   0x4   :  { %2317 = vmatpush3.bf16.msra.mxu0 %v2657_v4  ;;  %132 = vrot.lane.b32.xlu0 %v1981_v7, %s2581_s2  ;;  %s2582_s28 = smov 32   ;;  %v45_v14 = vld [vmem:[%s2988_s0] sm:$0x3]  ;;  %s2583_s12 = smov 96   ;;  %vm162_vm2 = vcmask 254976   ;;  %vm1013_vm3 = vcmask 785408  }
   0x5   :  { %2318 = vmatprep.subr.bf16.mxu0 %v2578_v3  ;;  %2323 = vmatpush3.bf16.msra.mxu1 %v2657_v4  ;;  %v1982_v35 = vld [vmem:[%s2988_s0 + $0x2] sm:$0x3]  ;;  %v1985_v55 = vld [vmem:[%s2988_s0 + $0x4] sm:$0x3] }
   0x6   :  { %2324 = vmatprep.subr.bf16.mxu1 %v2578_v3 }
   0x8   :  { %2320 = vmatpush3.bf16.msra.mxu0 %v2671_v8 }
   0x9   :  { %2326 = vmatpush3.bf16.msra.mxu1 %v2671_v8  ;;  %2327 = vmatprep.subr.bf16.mxu0 %v2578_v3 }
   0xa   :  { %2333 = vmatprep.subr.bf16.mxu1 %v2578_v3 }
   0xb   :  { %2126 = vmatmul.mubr.msk.f32.vlgmr.msra.gmra.mrb[0].mxu0 %vm46_vm1, %v44_v9 }
   0xc   :  { %2329 = vmatpush3.bf16.msra.mxu0 %v2657_v4  ;;  %2147 = vmatprep.mubr.msk.f32.mxu0 %vm2579_vm0, %v2580_v6 }
   0xd   :  { %2330 = vmatprep.subr.bf16.mxu0 %v2578_v3 }
  0x10   :  { %2332 = vmatpush3.bf16.msra.mxu0 %v2671_v8 }
  0x11   :  { %2339 = vmatprep.subr.bf16.mxu0 %v2578_v3 }
  0x76   :  { %v2691_v10 = vpop.permute.xlu0 %132 }
  0xde   :  { %v116_v11 = vpop.f32.mrb[0].mxu0 }
  0xdf   :  { %v135_v12 = vadd.f32 %v2691_v10, %v116_v11  ;;  %v2127_v13 = vpop.f32.mrb[1].mxu0  ;;  %v120_v15 = vadd.f32 %v116_v11, %v45_v14 }
  0xe1   :  { %137 = vrot.lane.b32.xlu0 %v135_v12, %s2581_s2  ;;  %v1980_v16 = vmul.f32 -1.442695, %v120_v15 }
  0xe3   :  { %2434 = vpow2.f32 %v1980_v16  ;;  %v1988_v16 = vld [vmem:[%s2988_s0 + $0x6] sm:$0x3] }
  0xe5   :  { %153 = vrot.lane.b32.xlu0 %v44_v9, %s2582_s28 }
  0xed   :  { %v2435_v17 = vpop.eup %2434 }
  0xee   :  { %v124_v18 = vadd.f32 1.0, %v2435_v17 }
  0xf0   :  { %2436 = vrcp.f32 %v124_v18 }
  0xfa   :  { %v2437_v19 = vpop.eup %2436 }
  0xfb   :  { %v147_v26 = vsub.f32 1.0, %v2437_v19 }
 0x153   :  { %v138_v20 = vpop.permute.xlu0 %137 }
 0x154   :  { %v140_v21 = vmul.f32 %v2437_v19, %v138_v20 }
 0x156   :  { %142 = vrot.lane.b32.xlu1 %v140_v21, %s2581_s2 }
 0x157   :  { %v154_v25 = vpop.permute.xlu0 %153 }
 0x158   :  { %v156_v28 = vmul.f32 %v2437_v19, %v154_v25 }
 0x1c8   :  { %v143_v22 = vpop.permute.xlu1 %142 }
 0x1c9   :  { %v145_v23 = vadd.f32 %v143_v22, %v45_v14 }
 0x1cb   :  { %2438 = vtanh.f32 %v145_v23 }
 0x1d5   :  { %v2439_v24 = vpop.eup %2438 }
 0x1d6   :  { %149 = vrot.lane.b32.xlu1 %v2439_v24, %s2583_s12 }
 0x248   :  { %v150_v27 = vpop.permute.xlu1 %149 }
 0x249   :  { %v152_v29 = vmul.f32 %v150_v27, %v147_v26 }
 0x24b   :  { %v157_v30 = vadd.f32 %v156_v28, %v152_v29 }
 0x24d   :  { %159 = vrot.lane.b32.xlu1 %v157_v30, %s2583_s12 }
 0x2bf   :  { %v160_v31 = vpop.permute.xlu1 %159 }
 0x2c0   :  { %163 = vst.msk [vmem:[#allocation3] sm:$0x3] %vm162_vm2, %v160_v31  ;;  %2137 = vmatmul.mubr.msk.f32.vlgmr.msra.gmra.mrb[0].mxu1 %vm46_vm1, %v160_v31 }
 0x2c1   :  { %2335 = vmatpush3.bf16.msra.mxu1 %v2657_v4  ;;  %2158 = vmatprep.mubr.msk.f32.mxu1 %vm2579_vm0, %v2580_v6 }
 0x2c2   :  { %2336 = vmatprep.subr.bf16.mxu1 %v2578_v3 }
 0x2c5   :  { %2338 = vmatpush3.bf16.msra.mxu1 %v2671_v8 }
 0x2c6   :  { %2345 = vmatprep.subr.bf16.mxu1 %v2578_v3 }
 0x393   :  { %v234_v32 = vpop.f32.mrb[0].mxu1 }
 0x394   :  { %v245_v33 = vadd.f32 %v234_v32, %v2691_v10  ;;  %v2138_v34 = vpop.f32.mrb[1].mxu1  ;;  %v238_v36 = vadd.f32 %v1982_v35, %v234_v32 }
 0x396   :  { %247 = vrot.lane.b32.xlu0 %v245_v33, %s2581_s2  ;;  %v1984_v37 = vmul.f32 -1.442695, %v238_v36  ;;  %v1991_v36 = vld [vmem:[%s2988_s0 + $0x8] sm:$0x3] }
 0x398   :  { %2440 = vpow2.f32 %v1984_v37 }
 0x3a2   :  { %v2441_v38 = vpop.eup %2440 }
 0x3a3   :  { %v242_v39 = vadd.f32 1.0, %v2441_v38 }
 0x3a5   :  { %2442 = vrcp.f32 %v242_v39 }
 0x3af   :  { %v2443_v40 = vpop.eup %2442 }
 0x3b0   :  { %v257_v46 = vsub.f32 1.0, %v2443_v40  ;;  %v263_v48 = vmul.f32 %v2443_v40, %v157_v30 }
 0x408   :  { %v248_v41 = vpop.permute.xlu0 %247 }
 0x409   :  { %v250_v42 = vmul.f32 %v2443_v40, %v248_v41 }
 0x40b   :  { %252 = vrot.lane.b32.xlu1 %v250_v42, %s2581_s2 }
 0x47d   :  { %v253_v43 = vpop.permute.xlu1 %252 }
 0x47e   :  { %v255_v44 = vadd.f32 %v1982_v35, %v253_v43 }
 0x480   :  { %2444 = vtanh.f32 %v255_v44 }
 0x48a   :  { %v2445_v45 = vpop.eup %2444 }
 0x48b   :  { %259 = vrot.lane.b32.xlu0 %v2445_v45, %s2583_s12 }
 0x4fd   :  { %v260_v47 = vpop.permute.xlu0 %259 }
 0x4fe   :  { %v262_v49 = vmul.f32 %v260_v47, %v257_v46 }
 0x500   :  { %v264_v50 = vadd.f32 %v263_v48, %v262_v49 }
 0x502   :  { %266 = vrot.lane.b32.xlu1 %v264_v50, %s2583_s12 }
 0x574   :  { %v267_v51 = vpop.permute.xlu1 %266 }
 0x575   :  { %270 = vst.msk [vmem:[#allocation3 + $0x2] sm:$0x3] %vm162_vm2, %v267_v51  ;;  %2148 = vmatmul.mubr.msk.f32.vlgmr.msra.gmra.mrb[2].mxu0 %vm46_vm1, %v267_v51 }
 0x576   :  { %2341 = vmatpush3.bf16.msra.mxu0 %v2657_v4  ;;  %2169 = vmatprep.mubr.msk.f32.mxu0 %vm2579_vm0, %v2580_v6 }
 0x577   :  { %2342 = vmatprep.subr.bf16.mxu0 %v2578_v3 }
 0x57a   :  { %2344 = vmatpush3.bf16.msra.mxu0 %v2671_v8 }
 0x57b   :  { %2351 = vmatprep.subr.bf16.mxu0 %v2578_v3 }
 0x648   :  { %v341_v52 = vpop.f32.mrb[2].mxu0 }
 0x649   :  { %v352_v53 = vadd.f32 %v341_v52, %v2691_v10  ;;  %v2149_v54 = vpop.f32.mrb[3].mxu0  ;;  %v345_v56 = vadd.f32 %v1985_v55, %v341_v52 }
 0x64b   :  { %354 = vrot.lane.b32.xlu0 %v352_v53, %s2581_s2  ;;  %v1987_v57 = vmul.f32 -1.442695, %v345_v56  ;;  %v1994_v56 = vld [vmem:[%s2988_s0 + $0xa] sm:$0x3] }
 0x64d   :  { %2446 = vpow2.f32 %v1987_v57 }
 0x657   :  { %v2447_v58 = vpop.eup %2446 }
 0x658   :  { %v349_v59 = vadd.f32 1.0, %v2447_v58 }
 0x65a   :  { %2448 = vrcp.f32 %v349_v59 }
 0x664   :  { %v2449_v60 = vpop.eup %2448 }
 0x665   :  { %v364_v2 = vsub.f32 1.0, %v2449_v60  ;;  %v370_v7 = vmul.f32 %v2449_v60, %v264_v50 }
 0x6bd   :  { %v355_v61 = vpop.permute.xlu0 %354 }
 0x6be   :  { %v357_v62 = vmul.f32 %v2449_v60, %v355_v61 }
 0x6c0   :  { %359 = vrot.lane.b32.xlu1 %v357_v62, %s2581_s2 }
 0x732   :  { %v360_v63 = vpop.permute.xlu1 %359 }
 0x733   :  { %v362_v0 = vadd.f32 %v1985_v55, %v360_v63 }
 0x735   :  { %2450 = vtanh.f32 %v362_v0 }
 0x73f   :  { %v2451_v1 = vpop.eup %2450 }
 0x740   :  { %366 = vrot.lane.b32.xlu0 %v2451_v1, %s2583_s12 }
 0x7b2   :  { %v367_v5 = vpop.permute.xlu0 %366 }
 0x7b3   :  { %v369_v9 = vmul.f32 %v367_v5, %v364_v2 }
 0x7b5   :  { %v371_v11 = vadd.f32 %v370_v7, %v369_v9 }
 0x7b7   :  { %373 = vrot.lane.b32.xlu1 %v371_v11, %s2583_s12 }
 0x829   :  { %v374_v12 = vpop.permute.xlu1 %373 }
 0x82a   :  { %377 = vst.msk [vmem:[#allocation3 + $0x4] sm:$0x3] %vm162_vm2, %v374_v12  ;;  %2159 = vmatmul.mubr.msk.f32.vlgmr.msra.gmra.mrb[2].mxu1 %vm46_vm1, %v374_v12 }
 0x82b   :  { %2347 = vmatpush3.bf16.msra.mxu1 %v2657_v4  ;;  %2180 = vmatprep.mubr.msk.f32.mxu1 %vm2579_vm0, %v2580_v6 }
 0x82c   :  { %2348 = vmatprep.subr.bf16.mxu1 %v2578_v3 }
 0x82f   :  { %2350 = vmatpush3.bf16.msra.mxu1 %v2671_v8 }
 0x830   :  { %2357 = vmatprep.subr.bf16.mxu1 %v2578_v3 }
 0x8fd   :  { %v448_v13 = vpop.f32.mrb[2].mxu1 }
 0x8fe   :  { %v459_v14 = vadd.f32 %v448_v13, %v2691_v10  ;;  %v2160_v15 = vpop.f32.mrb[3].mxu1  ;;  %v452_v17 = vadd.f32 %v1988_v16, %v448_v13 }
 0x900   :  { %461 = vrot.lane.b32.xlu0 %v459_v14, %s2581_s2  ;;  %v1990_v18 = vmul.f32 -1.442695, %v452_v17 }
 0x902   :  { %2452 = vpow2.f32 %v1990_v18 }
 0x90c   :  { %v2453_v19 = vpop.eup %2452 }
 0x90d   :  { %v456_v20 = vadd.f32 1.0, %v2453_v19 }
 0x90f   :  { %2454 = vrcp.f32 %v456_v20 }
 0x919   :  { %v2455_v21 = vpop.eup %2454 }
 0x91a   :  { %v471_v27 = vsub.f32 1.0, %v2455_v21  ;;  %v477_v29 = vmul.f32 %v2455_v21, %v371_v11 }
 0x972   :  { %v462_v22 = vpop.permute.xlu0 %461 }
 0x973   :  { %v464_v23 = vmul.f32 %v2455_v21, %v462_v22 }
 0x975   :  { %466 = vrot.lane.b32.xlu1 %v464_v23, %s2581_s2 }
 0x9e7   :  { %v467_v24 = vpop.permute.xlu1 %466 }
 0x9e8   :  { %v469_v25 = vadd.f32 %v1988_v16, %v467_v24  ;;  %v1997_v16 = vld [vmem:[%s2988_s0 + $0xc] sm:$0x3] }
 0x9ea   :  { %2456 = vtanh.f32 %v469_v25 }
 0x9f4   :  { %v2457_v26 = vpop.eup %2456 }
 0x9f5   :  { %473 = vrot.lane.b32.xlu0 %v2457_v26, %s2583_s12 }
 0xa67   :  { %v474_v28 = vpop.permute.xlu0 %473 }
 0xa68   :  { %v476_v30 = vmul.f32 %v474_v28, %v471_v27 }
 0xa6a   :  { %v478_v31 = vadd.f32 %v477_v29, %v476_v30 }
 0xa6c   :  { %480 = vrot.lane.b32.xlu1 %v478_v31, %s2583_s12 }
 0xade   :  { %v481_v32 = vpop.permute.xlu1 %480 }
 0xadf   :  { %484 = vst.msk [vmem:[#allocation3 + $0x6] sm:$0x3] %vm162_vm2, %v481_v32  ;;  %2170 = vmatmul.mubr.msk.f32.vlgmr.msra.gmra.mrb[4].mxu0 %vm46_vm1, %v481_v32 }
 0xae0   :  { %2353 = vmatpush3.bf16.msra.mxu0 %v2657_v4  ;;  %2191 = vmatprep.mubr.msk.f32.mxu0 %vm2579_vm0, %v2580_v6 }
 0xae1   :  { %2354 = vmatprep.subr.bf16.mxu0 %v2578_v3 }
 0xae4   :  { %2356 = vmatpush3.bf16.msra.mxu0 %v2671_v8 }
 0xae6   :  { %v919_v12 = vld [vmem:[#allocation3] sm:$0xff] }
 0xbb2   :  { %v555_v33 = vpop.f32.mrb[4].mxu0 }
 0xbb3   :  { %v566_v34 = vadd.f32 %v555_v33, %v2691_v10  ;;  %v2171_v35 = vpop.f32.mrb[5].mxu0  ;;  %v559_v37 = vadd.f32 %v1991_v36, %v555_v33 }
 0xbb5   :  { %568 = vrot.lane.b32.xlu0 %v566_v34, %s2581_s2  ;;  %v1993_v38 = vmul.f32 -1.442695, %v559_v37 }
 0xbb7   :  { %2458 = vpow2.f32 %v1993_v38 }
 0xbc1   :  { %v2459_v39 = vpop.eup %2458 }
 0xbc2   :  { %v563_v40 = vadd.f32 1.0, %v2459_v39 }
 0xbc4   :  { %2460 = vrcp.f32 %v563_v40 }
 0xbce   :  { %v2461_v41 = vpop.eup %2460 }
 0xbcf   :  { %v578_v47 = vsub.f32 1.0, %v2461_v41  ;;  %v584_v49 = vmul.f32 %v2461_v41, %v478_v31 }
 0xc27   :  { %v569_v42 = vpop.permute.xlu0 %568 }
 0xc28   :  { %v571_v43 = vmul.f32 %v2461_v41, %v569_v42 }
 0xc2a   :  { %573 = vrot.lane.b32.xlu1 %v571_v43, %s2581_s2 }
 0xc9c   :  { %v574_v44 = vpop.permute.xlu1 %573 }
 0xc9d   :  { %v576_v45 = vadd.f32 %v1991_v36, %v574_v44  ;;  %v2000_v36 = vld [vmem:[%s2988_s0 + $0xe] sm:$0x3] }
 0xc9f   :  { %2462 = vtanh.f32 %v576_v45  ;;  %v914_v45 = vld [vmem:[%s2994_s6] sm:$0xff] }
 0xca9   :  { %v2463_v46 = vpop.eup %2462 }
 0xcaa   :  { %580 = vrot.lane.b32.xlu0 %v2463_v46, %s2583_s12  ;;  %v915_v46 = vld [vmem:[%s2994_s6 + $0x8] sm:$0xff] }
 0xd1c   :  { %v581_v48 = vpop.permute.xlu0 %580 }
 0xd1d   :  { %v583_v50 = vmul.f32 %v581_v48, %v578_v47  ;;  %v916_v47 = vld [vmem:[%s2994_s6 + $0x10] sm:$0xff]  ;;  %v2811_v48 = vpack.c.bf16 %v915_v46, %v914_v45 }
 0xd1f   :  { %v585_v51 = vadd.f32 %v584_v49, %v583_v50  ;;  %v917_v49 = vld [vmem:[%s2994_s6 + $0x18] sm:$0xff] }
 0xd20   :  { %v2817_v50 = vpack.c.bf16 %v917_v49, %v916_v47 }
 0xd21   :  { %587 = vrot.lane.b32.xlu1 %v585_v51, %s2583_s12 }
 0xd93   :  { %v588_v52 = vpop.permute.xlu1 %587 }
 0xd94   :  { %591 = vst.msk [vmem:[#allocation3 + $0x8] sm:$0x3] %vm162_vm2, %v588_v52  ;;  %2181 = vmatmul.mubr.msk.f32.vlgmr.msra.gmra.mrb[4].mxu1 %vm46_vm1, %v588_v52 }
 0xd95   :  { %2359 = vmatpush3.bf16.msra.mxu1 %v2657_v4  ;;  %2202 = vmatprep.mubr.msk.f32.mxu1 %vm2579_vm0, %v2580_v6 }
 0xd96   :  { %2360 = vmatprep.subr.bf16.mxu1 %v2578_v3 }
 0xd99   :  { %2362 = vmatpush3.bf16.msra.mxu1 %v2671_v8 }
 0xd9a   :  { %2371 = vmatprep.subr.bf16.mxu1 %v2578_v3 }
 0xe67   :  { %v662_v53 = vpop.f32.mrb[4].mxu1 }
 0xe68   :  { %v673_v54 = vadd.f32 %v662_v53, %v2691_v10  ;;  %v2182_v55 = vpop.f32.mrb[5].mxu1  ;;  %v666_v4 = vadd.f32 %v1994_v56, %v662_v53  ;;  %v921_v53 = vld [vmem:[%s2992_s4] sm:$0xff] }
 0xe6a   :  { %675 = vrot.lane.b32.xlu0 %v673_v54, %s2581_s2  ;;  %v1996_v57 = vmul.f32 -1.442695, %v666_v4  ;;  %v922_v54 = vld [vmem:[%s2992_s4 + $0x8] sm:$0xff]  ;;  %v924_v4 = vld [vmem:[%s2992_s4 + $0x18] sm:$0xff] }
 0xe6b   :  { %v2363_v55 = vpack.c.bf16 %v922_v54, %v921_v53 }
 0xe6c   :  { %2464 = vpow2.f32 %v1996_v57 }
 0xe6d   :  { %2364 = vmatprep.subr.bf16.mxu0 %v2363_v55 }
 0xe76   :  { %v2465_v58 = vpop.eup %2464 }
 0xe77   :  { %v670_v59 = vadd.f32 1.0, %v2465_v58 }
 0xe79   :  { %2466 = vrcp.f32 %v670_v59 }
 0xe83   :  { %v2467_v60 = vpop.eup %2466 }
 0xe84   :  { %v685_v1 = vsub.f32 1.0, %v2467_v60  ;;  %v691_v5 = vmul.f32 %v2467_v60, %v585_v51  ;;  %v2006_v51 = vld [vmem:[%s2989_s1 + $0x2] sm:$0x3] }
 0xedc   :  { %v676_v8 = vpop.permute.xlu0 %675 }
 0xedd   :  { %v678_v61 = vmul.f32 %v2467_v60, %v676_v8  ;;  %v2009_v60 = vld [vmem:[%s2995_s7] ss:$0 sm:$0xff] }
 0xedf   :  { %680 = vrot.lane.b32.xlu1 %v678_v61, %s2581_s2 }
 0xf51   :  { %v681_v62 = vpop.permute.xlu1 %680 }
 0xf52   :  { %v683_v63 = vadd.f32 %v1994_v56, %v681_v62  ;;  %v923_v56 = vld [vmem:[%s2992_s4 + $0x10] sm:$0xff] }
 0xf53   :  { %v2367_v57 = vpack.c.bf16 %v924_v4, %v923_v56 }
 0xf54   :  { %2468 = vtanh.f32 %v683_v63 }
 0xf5e   :  { %v2469_v0 = vpop.eup %2468 }
 0xf5f   :  { %687 = vrot.lane.b32.xlu0 %v2469_v0, %s2583_s12 }
 0xfd1   :  { %v688_v2 = vpop.permute.xlu0 %687 }
 0xfd2   :  { %v690_v7 = vmul.f32 %v688_v2, %v685_v1 }
 0xfd4   :  { %v692_v9 = vadd.f32 %v691_v5, %v690_v7 }
 0xfd6   :  { %694 = vrot.lane.b32.xlu1 %v692_v9, %s2583_s12 }
0x1048   :  { %v695_v11 = vpop.permute.xlu1 %694 }
0x1049   :  { %698 = vst.msk [vmem:[#allocation3 + $0xa] sm:$0x3] %vm162_vm2, %v695_v11  ;;  %2192 = vmatmul.mubr.msk.f32.vlgmr.msra.gmra.mrb[6].mxu0 %vm46_vm1, %v695_v11 }
0x104a   :  { %2213 = vmatprep.mubr.msk.f32.mxu0 %vm46_vm1, %v919_v12  ;;  %2366 = vmatpush3.bf16.msra.mxu0 %v2363_v55 }
0x104b   :  { %2368 = vmatprep.subr.bf16.mxu0 %v2367_v57 }
0x104e   :  { %2370 = vmatpush3.bf16.msra.mxu0 %v2367_v57 }
0x104f   :  { %2377 = vmatprep.subr.bf16.mxu0 %v2578_v3 }
0x111c   :  { %v769_v13 = vpop.f32.mrb[6].mxu0 }
0x111d   :  { %v780_v14 = vadd.f32 %v769_v13, %v2691_v10  ;;  %v2193_v15 = vpop.f32.mrb[7].mxu0  ;;  %v773_v17 = vadd.f32 %v1997_v16, %v769_v13 }
0x111f   :  { %782 = vrot.lane.b32.xlu0 %v780_v14, %s2581_s2  ;;  %v1999_v18 = vmul.f32 -1.442695, %v773_v17 }
0x1121   :  { %2470 = vpow2.f32 %v1999_v18 }
0x112b   :  { %v2471_v19 = vpop.eup %2470 }
0x112c   :  { %v777_v20 = vadd.f32 1.0, %v2471_v19 }
0x112e   :  { %2472 = vrcp.f32 %v777_v20 }
0x1138   :  { %v2473_v21 = vpop.eup %2472 }
0x1139   :  { %v792_v27 = vsub.f32 1.0, %v2473_v21  ;;  %v798_v29 = vmul.f32 %v2473_v21, %v692_v9  ;;  %v2003_v9 = vld [vmem:[%s2993_s5] ss:$0 sm:$0xff] }
0x1191   :  { %v783_v22 = vpop.permute.xlu0 %782 }
0x1192   :  { %v785_v23 = vmul.f32 %v2473_v21, %v783_v22 }
0x1194   :  { %787 = vrot.lane.b32.xlu1 %v785_v23, %s2581_s2 }
0x1206   :  { %v788_v24 = vpop.permute.xlu1 %787 }
0x1207   :  { %v790_v25 = vadd.f32 %v1997_v16, %v788_v24 }
0x1209   :  { %2474 = vtanh.f32 %v790_v25 }
0x1213   :  { %v2475_v26 = vpop.eup %2474 }
0x1214   :  { %794 = vrot.lane.b32.xlu0 %v2475_v26, %s2583_s12 }
0x1286   :  { %v795_v28 = vpop.permute.xlu0 %794 }
0x1287   :  { %v797_v30 = vmul.f32 %v795_v28, %v792_v27 }
0x1289   :  { %v799_v31 = vadd.f32 %v798_v29, %v797_v30 }
0x128b   :  { %801 = vrot.lane.b32.xlu1 %v799_v31, %s2583_s12 }
0x12fd   :  { %v802_v32 = vpop.permute.xlu1 %801 }
0x12fe   :  { %805 = vst.msk [vmem:[#allocation3 + $0xc] sm:$0x3] %vm162_vm2, %v802_v32  ;;  %2203 = vmatmul.mubr.msk.f32.vlgmr.msra.gmra.mrb[6].mxu1 %vm46_vm1, %v802_v32 }
0x12ff   :  { %2224 = vmatprep.mubr.msk.f32.mxu1 %vm2579_vm0, %v2580_v6  ;;  %2373 = vmatpush3.bf16.msra.mxu1 %v2811_v48 }
0x1300   :  { %2374 = vmatprep.subr.bf16.mxu1 %v2578_v3 }
0x1303   :  { %2376 = vmatpush3.bf16.msra.mxu1 %v2817_v50 }
0x1304   :  { %2383 = vmatprep.subr.bf16.mxu1 %v2578_v3 }
0x1306   :  { %2225 = vmatmul.mubr.msk.f32.vlgmr.msra.gmra.mrb[8].mxu1 %vm46_vm1, %v2006_v51 }
0x1307   :  { %2385 = vmatpush3.bf16.msra.mxu1 %v2811_v48  ;;  %2246 = vmatprep.mubr.msk.f32.mxu1 %vm2579_vm0, %v2580_v6 }
0x1308   :  { %2386 = vmatprep.subr.bf16.mxu1 %v2578_v3 }
0x130b   :  { %2388 = vmatpush3.bf16.msra.mxu1 %v2817_v50 }
0x130c   :  { %2395 = vmatprep.subr.bf16.mxu1 %v2578_v3 }
0x13d1   :  { %v876_v33 = vpop.f32.mrb[6].mxu1 }
0x13d2   :  { %v887_v34 = vadd.f32 %v876_v33, %v2691_v10  ;;  %v2204_v35 = vpop.f32.mrb[7].mxu1  ;;  %v880_v37 = vadd.f32 %v2000_v36, %v876_v33 }
0x13d4   :  { %889 = vrot.lane.b32.xlu0 %v887_v34, %s2581_s2  ;;  %v2002_v38 = vmul.f32 -1.442695, %v880_v37 }
0x13d6   :  { %2476 = vpow2.f32 %v2002_v38 }
0x13d9   :  { %v1088_v63 = vpop.f32.mrb[8].mxu1 }
0x13da   :  { %v2226_v0 = vpop.f32.mrb[9].mxu1 }
0x13e0   :  { %v2477_v39 = vpop.eup %2476 }
0x13e1   :  { %v884_v40 = vadd.f32 1.0, %v2477_v39 }
0x13e3   :  { %2478 = vrcp.f32 %v884_v40 }
0x13ed   :  { %v2479_v41 = vpop.eup %2478 }
0x13ee   :  { %v899_v58 = vsub.f32 1.0, %v2479_v41  ;;  %v905_v8 = vmul.f32 %v2479_v41, %v799_v31 }
0x1446   :  { %v890_v42 = vpop.permute.xlu0 %889 }
0x1447   :  { %v892_v43 = vmul.f32 %v2479_v41, %v890_v42 }
0x1449   :  { %894 = vrot.lane.b32.xlu1 %v892_v43, %s2581_s2 }
0x14bb   :  { %v895_v44 = vpop.permute.xlu1 %894 }
0x14bc   :  { %v897_v10 = vadd.f32 %v2000_v36, %v895_v44 }
0x14be   :  { %2480 = vtanh.f32 %v897_v10 }
0x14c8   :  { %v2481_v52 = vpop.eup %2480 }
0x14c9   :  { %901 = vrot.lane.b32.xlu0 %v2481_v52, %s2583_s12 }
0x14cd   :  { %1104 = vrot.lane.b32.xlu0 %v2009_v60, %s2581_s2 }
0x153b   :  { %v902_v59 = vpop.permute.xlu0 %901 }
0x153c   :  { %v904_v61 = vmul.f32 %v902_v59, %v899_v58 }
0x153e   :  { %v906_v62 = vadd.f32 %v905_v8, %v904_v61 }
0x153f   :  { %v2851_v1 = vpop.permute.xlu0 %1104 }
0x1540   :  { %908 = vrot.lane.b32.xlu1 %v906_v62, %s2583_s12  ;;  %v1107_v2 = vadd.f32 %v2851_v1, %v1088_v63 }
0x1544   :  { %1109 = vrot.lane.b32.xlu1 %v1107_v2, %s2581_s2 }
0x15b2   :  { %v909_v5 = vpop.permute.xlu1 %908 }
0x15b3   :  { %912 = vst.msk [vmem:[#allocation3 + $0xe] sm:$0x3] %vm162_vm2, %v909_v5  ;;  %913 = vst.msk [vmem:[#allocation6] sm:$0x3] %vm162_vm2, %v909_v5 }
0x15b6   :  { %v1110_v20 = vpop.permute.xlu1 %1109 }
0x15ba   :  { %v920_v7 = vld [vmem:[#allocation3 + $0x8] sm:$0xff] }
0x15bb   :  { %2214 = vmatmul.mubr.msk.f32.vlgmr.msra.gmra.mrb[8].mxu0 %vm46_vm1, %v920_v7 }
0x15bc   :  { %2379 = vmatpush3.bf16.msra.mxu0 %v2811_v48  ;;  %2235 = vmatprep.mubr.msk.f32.mxu0 %vm2579_vm0, %v2580_v6 }
0x15bd   :  { %2380 = vmatprep.subr.bf16.mxu0 %v2578_v3 }
0x15c0   :  { %2382 = vmatpush3.bf16.msra.mxu0 %v2817_v50 }
0x15c1   :  { %2389 = vmatprep.subr.bf16.mxu0 %v2578_v3 }
0x168e   :  { %v2215_v11 = vpop.f32.mrb[8].mxu0 }
0x168f   :  { %v1010_v12 = vadd.f32 %v2215_v11, %v2003_v9  ;;  %v1004_v13 = vpop.f32.mrb[9].mxu0 }
0x1690   :  { %v1005_v14 = vadd.f32 %v2003_v9, %v1004_v13 }
0x1691   :  { %1015 = vst.msk [vmem:[#allocation2 + $0x8] sm:$0xff] %vm1013_vm3, %v1010_v12 }
0x1692   :  { %1014 = vst.msk [vmem:[#allocation2] sm:$0xff] %vm1013_vm3, %v1005_v14 }
0x1699   :  { %v1018_v15 = vld [vmem:[#allocation2] sm:$0x3]  ;;  %v1131_v36 = vld [vmem:[#allocation2 + $0x2] sm:$0x3]  ;;  %v1235_v4 = vld [vmem:[#allocation2 + $0x4] sm:$0x3] }
0x169a   :  { %v1092_v16 = vadd.f32 %v1088_v63, %v1018_v15 }
0x169c   :  { %v2008_v17 = vmul.f32 -1.442695, %v1092_v16 }
0x169e   :  { %2482 = vpow2.f32 %v2008_v17  ;;  %v1339_v17 = vld [vmem:[#allocation2 + $0x6] sm:$0x3] }
0x16a8   :  { %v2483_v18 = vpop.eup %2482 }
0x16a9   :  { %v1096_v19 = vadd.f32 1.0, %v2483_v18 }
0x16ab   :  { %2484 = vrcp.f32 %v1096_v19 }
0x16b5   :  { %v2485_v21 = vpop.eup %2484 }
0x16b6   :  { %v1112_v22 = vmul.f32 %v2485_v21, %v1110_v20  ;;  %v1119_v27 = vsub.f32 1.0, %v2485_v21 }
0x16b8   :  { %1114 = vrot.lane.b32.xlu0 %v1112_v22, %s2581_s2 }
0x16bc   :  { %1125 = vrot.lane.b32.xlu0 %v2006_v51, %s2582_s28 }
0x172a   :  { %v1115_v23 = vpop.permute.xlu0 %1114 }
0x172b   :  { %v1117_v24 = vadd.f32 %v1115_v23, %v1018_v15 }
0x172d   :  { %2486 = vtanh.f32 %v1117_v24 }
0x172e   :  { %v1126_v26 = vpop.permute.xlu0 %1125 }
0x172f   :  { %v1128_v29 = vmul.f32 %v2485_v21, %v1126_v26 }
0x1737   :  { %v2487_v25 = vpop.eup %2486 }
0x1738   :  { %1121 = vrot.lane.b32.xlu1 %v2487_v25, %s2583_s12 }
0x17aa   :  { %v1122_v28 = vpop.permute.xlu1 %1121 }
0x17ab   :  { %v1124_v30 = vmul.f32 %v1122_v28, %v1119_v27 }
0x17ad   :  { %v1129_v31 = vadd.f32 %v1128_v29, %v1124_v30 }
0x17af   :  { %1133 = vrot.lane.b32.xlu1 %v1129_v31, %s2583_s12 }
0x1821   :  { %v1134_v32 = vpop.permute.xlu1 %1133 }
0x1822   :  { %2236 = vmatmul.mubr.msk.f32.vlgmr.msra.gmra.mrb[10].mxu0 %vm46_vm1, %v1134_v32 }
0x1823   :  { %2391 = vmatpush3.bf16.msra.mxu0 %v2811_v48  ;;  %2257 = vmatprep.mubr.msk.f32.mxu0 %vm2579_vm0, %v2580_v6 }
0x1824   :  { %2392 = vmatprep.subr.bf16.mxu0 %v2578_v3 }
0x1827   :  { %2394 = vmatpush3.bf16.msra.mxu0 %v2817_v50 }
0x1828   :  { %2401 = vmatprep.subr.bf16.mxu0 %v2578_v3 }
0x18f5   :  { %v1203_v33 = vpop.f32.mrb[10].mxu0 }
0x18f6   :  { %v1214_v34 = vadd.f32 %v1203_v33, %v2851_v1  ;;  %v2237_v35 = vpop.f32.mrb[11].mxu0  ;;  %v1207_v37 = vadd.f32 %v1203_v33, %v1131_v36 }
0x18f8   :  { %1216 = vrot.lane.b32.xlu0 %v1214_v34, %s2581_s2  ;;  %v2011_v38 = vmul.f32 -1.442695, %v1207_v37  ;;  %v1443_v37 = vld [vmem:[#allocation2 + $0x8] sm:$0x3] }
0x18fa   :  { %2488 = vpow2.f32 %v2011_v38 }
0x1904   :  { %v2489_v39 = vpop.eup %2488 }
0x1905   :  { %v1211_v40 = vadd.f32 1.0, %v2489_v39 }
0x1907   :  { %2490 = vrcp.f32 %v1211_v40 }
0x1911   :  { %v2491_v41 = vpop.eup %2490 }
0x1912   :  { %v1226_v46 = vsub.f32 1.0, %v2491_v41  ;;  %v1232_v49 = vmul.f32 %v2491_v41, %v1129_v31 }
0x196a   :  { %v1217_v42 = vpop.permute.xlu0 %1216 }
0x196b   :  { %v1219_v43 = vmul.f32 %v2491_v41, %v1217_v42 }
0x196d   :  { %1221 = vrot.lane.b32.xlu1 %v1219_v43, %s2581_s2 }
0x19df   :  { %v1222_v44 = vpop.permute.xlu1 %1221 }
0x19e0   :  { %v1224_v10 = vadd.f32 %v1222_v44, %v1131_v36 }
0x19e2   :  { %2492 = vtanh.f32 %v1224_v10 }
0x19ec   :  { %v2493_v45 = vpop.eup %2492 }
0x19ed   :  { %1228 = vrot.lane.b32.xlu0 %v2493_v45, %s2583_s12 }
0x1a5f   :  { %v1229_v47 = vpop.permute.xlu0 %1228 }
0x1a60   :  { %v1231_v51 = vmul.f32 %v1229_v47, %v1226_v46 }
0x1a62   :  { %v1233_v52 = vadd.f32 %v1232_v49, %v1231_v51 }
0x1a64   :  { %1237 = vrot.lane.b32.xlu1 %v1233_v52, %s2583_s12 }
0x1ad6   :  { %v1238_v53 = vpop.permute.xlu1 %1237 }
0x1ad7   :  { %2247 = vmatmul.mubr.msk.f32.vlgmr.msra.gmra.mrb[10].mxu1 %vm46_vm1, %v1238_v53 }
0x1ad8   :  { %2397 = vmatpush3.bf16.msra.mxu1 %v2811_v48  ;;  %2268 = vmatprep.mubr.msk.f32.mxu1 %vm2579_vm0, %v2580_v6 }
0x1ad9   :  { %2398 = vmatprep.subr.bf16.mxu1 %v2578_v3 }
0x1adc   :  { %2400 = vmatpush3.bf16.msra.mxu1 %v2817_v50 }
0x1add   :  { %2407 = vmatprep.subr.bf16.mxu1 %v2578_v3 }
0x1baa   :  { %v1307_v54 = vpop.f32.mrb[10].mxu1 }
0x1bab   :  { %v1318_v55 = vadd.f32 %v1307_v54, %v2851_v1  ;;  %v2248_v56 = vpop.f32.mrb[11].mxu1  ;;  %v1311_v57 = vadd.f32 %v1307_v54, %v1235_v4 }
0x1bad   :  { %1320 = vrot.lane.b32.xlu0 %v1318_v55, %s2581_s2  ;;  %v2013_v58 = vmul.f32 -1.442695, %v1311_v57  ;;  %v1547_v57 = vld [vmem:[#allocation2 + $0xa] sm:$0x3] }
0x1baf   :  { %2494 = vpow2.f32 %v2013_v58 }
0x1bb9   :  { %v2495_v59 = vpop.eup %2494 }
0x1bba   :  { %v1315_v60 = vadd.f32 1.0, %v2495_v59 }
0x1bbc   :  { %2496 = vrcp.f32 %v1315_v60 }
0x1bc6   :  { %v2497_v8 = vpop.eup %2496 }
0x1bc7   :  { %v1330_v5 = vsub.f32 1.0, %v2497_v8  ;;  %v1336_v9 = vmul.f32 %v2497_v8, %v1233_v52 }
0x1c1f   :  { %v1321_v61 = vpop.permute.xlu0 %1320 }
0x1c20   :  { %v1323_v62 = vmul.f32 %v2497_v8, %v1321_v61 }
0x1c22   :  { %1325 = vrot.lane.b32.xlu1 %v1323_v62, %s2581_s2 }
0x1c94   :  { %v1326_v63 = vpop.permute.xlu1 %1325 }
0x1c95   :  { %v1328_v0 = vadd.f32 %v1326_v63, %v1235_v4 }
0x1c97   :  { %2498 = vtanh.f32 %v1328_v0 }
0x1ca1   :  { %v2499_v2 = vpop.eup %2498 }
0x1ca2   :  { %1332 = vrot.lane.b32.xlu0 %v2499_v2, %s2583_s12 }
0x1d14   :  { %v1333_v7 = vpop.permute.xlu0 %1332 }
0x1d15   :  { %v1335_v11 = vmul.f32 %v1333_v7, %v1330_v5 }
0x1d17   :  { %v1337_v12 = vadd.f32 %v1336_v9, %v1335_v11 }
0x1d19   :  { %1341 = vrot.lane.b32.xlu1 %v1337_v12, %s2583_s12 }
0x1d8b   :  { %v1342_v13 = vpop.permute.xlu1 %1341 }
0x1d8c   :  { %2258 = vmatmul.mubr.msk.f32.vlgmr.msra.gmra.mrb[12].mxu0 %vm46_vm1, %v1342_v13 }
0x1d8d   :  { %2403 = vmatpush3.bf16.msra.mxu0 %v2811_v48  ;;  %2279 = vmatprep.mubr.msk.f32.mxu0 %vm2579_vm0, %v2580_v6 }
0x1d8e   :  { %2404 = vmatprep.subr.bf16.mxu0 %v2578_v3 }
0x1d91   :  { %2406 = vmatpush3.bf16.msra.mxu0 %v2817_v50 }
0x1d92   :  { %2413 = vmatprep.subr.bf16.mxu0 %v2578_v3 }
0x1e5f   :  { %v1411_v14 = vpop.f32.mrb[12].mxu0 }
0x1e60   :  { %v1422_v15 = vadd.f32 %v1411_v14, %v2851_v1  ;;  %v2259_v16 = vpop.f32.mrb[13].mxu0  ;;  %v1415_v18 = vadd.f32 %v1411_v14, %v1339_v17 }
0x1e61   :  { %v1651_v16 = vld [vmem:[#allocation2 + $0xc] sm:$0x3] }
0x1e62   :  { %1424 = vrot.lane.b32.xlu0 %v1422_v15, %s2581_s2  ;;  %v2015_v19 = vmul.f32 -1.442695, %v1415_v18 }
0x1e64   :  { %2500 = vpow2.f32 %v2015_v19 }
0x1e6e   :  { %v2501_v20 = vpop.eup %2500 }
0x1e6f   :  { %v1419_v21 = vadd.f32 1.0, %v2501_v20 }
0x1e71   :  { %2502 = vrcp.f32 %v1419_v21 }
0x1e7b   :  { %v2503_v22 = vpop.eup %2502 }
0x1e7c   :  { %v1434_v28 = vsub.f32 1.0, %v2503_v22  ;;  %v1440_v30 = vmul.f32 %v2503_v22, %v1337_v12 }
0x1ed4   :  { %v1425_v23 = vpop.permute.xlu0 %1424 }
0x1ed5   :  { %v1427_v24 = vmul.f32 %v2503_v22, %v1425_v23 }
0x1ed7   :  { %1429 = vrot.lane.b32.xlu1 %v1427_v24, %s2581_s2 }
0x1f49   :  { %v1430_v25 = vpop.permute.xlu1 %1429 }
0x1f4a   :  { %v1432_v26 = vadd.f32 %v1430_v25, %v1339_v17 }
0x1f4c   :  { %2504 = vtanh.f32 %v1432_v26 }
0x1f56   :  { %v2505_v27 = vpop.eup %2504 }
0x1f57   :  { %1436 = vrot.lane.b32.xlu0 %v2505_v27, %s2583_s12 }
0x1fc9   :  { %v1437_v29 = vpop.permute.xlu0 %1436 }
0x1fca   :  { %v1439_v31 = vmul.f32 %v1437_v29, %v1434_v28 }
0x1fcc   :  { %v1441_v32 = vadd.f32 %v1440_v30, %v1439_v31 }
0x1fce   :  { %1445 = vrot.lane.b32.xlu1 %v1441_v32, %s2583_s12 }
0x2040   :  { %v1446_v33 = vpop.permute.xlu1 %1445 }
0x2041   :  { %2269 = vmatmul.mubr.msk.f32.vlgmr.msra.gmra.mrb[12].mxu1 %vm46_vm1, %v1446_v33 }
0x2042   :  { %2409 = vmatpush3.bf16.msra.mxu1 %v2811_v48  ;;  %2290 = vmatprep.mubr.msk.f32.mxu1 %vm2579_vm0, %v2580_v6 }
0x2043   :  { %2410 = vmatprep.subr.bf16.mxu1 %v2578_v3 }
0x2046   :  { %2412 = vmatpush3.bf16.msra.mxu1 %v2817_v50 }
0x2047   :  { %2419 = vmatprep.subr.bf16.mxu1 %v2578_v3 }
0x2114   :  { %v1515_v34 = vpop.f32.mrb[12].mxu1 }
0x2115   :  { %v1526_v35 = vadd.f32 %v1515_v34, %v2851_v1  ;;  %v2270_v36 = vpop.f32.mrb[13].mxu1  ;;  %v1519_v38 = vadd.f32 %v1515_v34, %v1443_v37 }
0x2117   :  { %1528 = vrot.lane.b32.xlu0 %v1526_v35, %s2581_s2  ;;  %v2017_v39 = vmul.f32 -1.442695, %v1519_v38  ;;  %v1755_v35 = vld [vmem:[#allocation2 + $0xe] sm:$0x3] }
0x2119   :  { %2506 = vpow2.f32 %v2017_v39 }
0x2123   :  { %v2507_v40 = vpop.eup %2506 }
0x2124   :  { %v1523_v41 = vadd.f32 1.0, %v2507_v40 }
0x2126   :  { %2508 = vrcp.f32 %v1523_v41 }
0x2130   :  { %v2509_v42 = vpop.eup %2508 }
0x2131   :  { %v1538_v47 = vsub.f32 1.0, %v2509_v42  ;;  %v1544_v51 = vmul.f32 %v2509_v42, %v1441_v32 }
0x2189   :  { %v1529_v43 = vpop.permute.xlu0 %1528 }
0x218a   :  { %v1531_v44 = vmul.f32 %v2509_v42, %v1529_v43 }
0x218c   :  { %1533 = vrot.lane.b32.xlu1 %v1531_v44, %s2581_s2 }
0x21fe   :  { %v1534_v10 = vpop.permute.xlu1 %1533 }
0x21ff   :  { %v1536_v45 = vadd.f32 %v1534_v10, %v1443_v37  ;;  %v1865_v10 = vld [vmem:[%s2996_s8 + $0x8] sm:$0xff] }
0x2201   :  { %2510 = vtanh.f32 %v1536_v45  ;;  %v1866_v45 = vld [vmem:[%s2996_s8 + $0x10] sm:$0xff] }
0x220b   :  { %v2511_v46 = vpop.eup %2510 }
0x220c   :  { %1540 = vrot.lane.b32.xlu0 %v2511_v46, %s2583_s12 }
0x227e   :  { %v1541_v49 = vpop.permute.xlu0 %1540 }
0x227f   :  { %v1543_v52 = vmul.f32 %v1541_v49, %v1538_v47  ;;  %v1867_v47 = vld [vmem:[%s2996_s8 + $0x18] sm:$0xff] }
0x2280   :  { %v2423_v49 = vpack.c.bf16 %v1867_v47, %v1866_v45 }
0x2281   :  { %v1545_v53 = vadd.f32 %v1544_v51, %v1543_v52 }
0x2283   :  { %1549 = vrot.lane.b32.xlu1 %v1545_v53, %s2583_s12 }
0x22f5   :  { %v1550_v54 = vpop.permute.xlu1 %1549 }
0x22f6   :  { %2280 = vmatmul.mubr.msk.f32.vlgmr.msra.gmra.mrb[14].mxu0 %vm46_vm1, %v1550_v54 }
0x22f7   :  { %2415 = vmatpush3.bf16.msra.mxu0 %v2811_v48  ;;  %2301 = vmatprep.mubr.msk.f32.mxu0 %vm2579_vm0, %v2580_v6 }
0x22f8   :  { %2416 = vmatprep.subr.bf16.mxu0 %v2578_v3 }
0x22fb   :  { %2418 = vmatpush3.bf16.msra.mxu0 %v2817_v50 }
0x23c9   :  { %v1619_v55 = vpop.f32.mrb[14].mxu0 }
0x23ca   :  { %v1630_v56 = vadd.f32 %v1619_v55, %v2851_v1  ;;  %v2281_v4 = vpop.f32.mrb[15].mxu0  ;;  %v1623_v58 = vadd.f32 %v1619_v55, %v1547_v57 }
0x23cc   :  { %1632 = vrot.lane.b32.xlu0 %v1630_v56, %s2581_s2  ;;  %v2019_v59 = vmul.f32 -1.442695, %v1623_v58 }
0x23ce   :  { %2512 = vpow2.f32 %v2019_v59 }
0x23d8   :  { %v2513_v60 = vpop.eup %2512 }
0x23d9   :  { %v1627_v8 = vadd.f32 1.0, %v2513_v60 }
0x23db   :  { %2514 = vrcp.f32 %v1627_v8 }
0x23e5   :  { %v2515_v48 = vpop.eup %2514 }
0x23e6   :  { %v1642_v2 = vsub.f32 1.0, %v2515_v48  ;;  %v1648_v7 = vmul.f32 %v2515_v48, %v1545_v53 }
0x243e   :  { %v1633_v61 = vpop.permute.xlu0 %1632 }
0x243f   :  { %v1635_v62 = vmul.f32 %v2515_v48, %v1633_v61 }
0x2441   :  { %1637 = vrot.lane.b32.xlu1 %v1635_v62, %s2581_s2 }
0x24b3   :  { %v1638_v63 = vpop.permute.xlu1 %1637 }
0x24b4   :  { %v1640_v50 = vadd.f32 %v1638_v63, %v1547_v57 }
0x24b6   :  { %2516 = vtanh.f32 %v1640_v50 }
0x24c0   :  { %v2517_v0 = vpop.eup %2516 }
0x24c1   :  { %1644 = vrot.lane.b32.xlu0 %v2517_v0, %s2583_s12 }
0x2533   :  { %v1645_v5 = vpop.permute.xlu0 %1644 }
0x2534   :  { %v1647_v9 = vmul.f32 %v1645_v5, %v1642_v2 }
0x2536   :  { %v1649_v11 = vadd.f32 %v1648_v7, %v1647_v9 }
0x2538   :  { %1653 = vrot.lane.b32.xlu1 %v1649_v11, %s2583_s12 }
0x25aa   :  { %v1654_v12 = vpop.permute.xlu1 %1653 }
0x25ab   :  { %2291 = vmatmul.mubr.msk.f32.vlgmr.msra.gmra.mrb[14].mxu1 %vm46_vm1, %v1654_v12 }
0x25ac   :  { %2312 = vmatprep.mubr.msk.f32.mxu1 %vm2579_vm0, %v2580_v6 }
0x267e   :  { %v1723_v13 = vpop.f32.mrb[14].mxu1 }
0x267f   :  { %v1734_v14 = vadd.f32 %v1723_v13, %v2851_v1  ;;  %v2292_v15 = vpop.f32.mrb[15].mxu1  ;;  %v1727_v17 = vadd.f32 %v1723_v13, %v1651_v16 }
0x2681   :  { %1736 = vrot.lane.b32.xlu0 %v1734_v14, %s2581_s2  ;;  %v2021_v18 = vmul.f32 -1.442695, %v1727_v17 }
0x2683   :  { %2518 = vpow2.f32 %v2021_v18 }
0x268d   :  { %v2519_v19 = vpop.eup %2518 }
0x268e   :  { %v1731_v20 = vadd.f32 1.0, %v2519_v19 }
0x2690   :  { %2520 = vrcp.f32 %v1731_v20 }
0x269a   :  { %v2521_v21 = vpop.eup %2520 }
0x269b   :  { %v1746_v26 = vsub.f32 1.0, %v2521_v21  ;;  %v1752_v28 = vmul.f32 %v2521_v21, %v1649_v11 }
0x26f3   :  { %v1737_v22 = vpop.permute.xlu0 %1736 }
0x26f4   :  { %v1739_v23 = vmul.f32 %v2521_v21, %v1737_v22 }
0x26f6   :  { %1741 = vrot.lane.b32.xlu1 %v1739_v23, %s2581_s2 }
0x2768   :  { %v1742_v24 = vpop.permute.xlu1 %1741 }
0x2769   :  { %v1744_v6 = vadd.f32 %v1742_v24, %v1651_v16 }
0x276b   :  { %2522 = vtanh.f32 %v1744_v6 }
0x2775   :  { %v2523_v25 = vpop.eup %2522 }
0x2776   :  { %1748 = vrot.lane.b32.xlu0 %v2523_v25, %s2583_s12 }
0x27e8   :  { %v1749_v27 = vpop.permute.xlu0 %1748 }
0x27e9   :  { %v1751_v29 = vmul.f32 %v1749_v27, %v1746_v26 }
0x27eb   :  { %v1753_v30 = vadd.f32 %v1752_v28, %v1751_v29 }
0x27ed   :  { %1757 = vrot.lane.b32.xlu1 %v1753_v30, %s2583_s12 }
0x285f   :  { %v1758_v31 = vpop.permute.xlu1 %1757 }
0x2860   :  { %2302 = vmatmul.mubr.msk.f32.vlgmr.msra.gmra.mrb[16].mxu0 %vm46_vm1, %v1758_v31 }
0x2933   :  { %v1827_v32 = vpop.f32.mrb[16].mxu0 }
0x2934   :  { %v1838_v33 = vadd.f32 %v1827_v32, %v2851_v1  ;;  %v2303_v34 = vpop.f32.mrb[17].mxu0  ;;  %v1831_v36 = vadd.f32 %v1827_v32, %v1755_v35  ;;  %v1864_v1 = vld [vmem:[%s2996_s8] sm:$0xff]  ;;  %s2584_s8 = smov [#allocation6]  }
0x2935   :  { %v2420_v46 = vpack.c.bf16 %v1865_v10, %v1864_v1 }
0x2936   :  { %1840 = vrot.lane.b32.xlu0 %v1838_v33, %s2581_s2  ;;  %v2023_v37 = vmul.f32 -1.442695, %v1831_v36 }
0x2937   :  { %2421 = vmatpush3.bf16.msra.mxu1 %v2420_v46 }
0x2938   :  { %2524 = vpow2.f32 %v2023_v37  ;;  %2422 = vmatprep.subr.bf16.mxu1 %v2578_v3 }
0x293b   :  { %2424 = vmatpush3.bf16.msra.mxu1 %v2423_v49 }
0x2942   :  { %v2525_v38 = vpop.eup %2524 }
0x2943   :  { %v1835_v39 = vadd.f32 1.0, %v2525_v38 }
0x2945   :  { %2526 = vrcp.f32 %v1835_v39 }
0x294f   :  { %v2527_v40 = vpop.eup %2526 }
0x2950   :  { %v1850_v52 = vsub.f32 1.0, %v2527_v40  ;;  %v1856_v54 = vmul.f32 %v2527_v40, %v1753_v30 }
0x29a8   :  { %v1841_v41 = vpop.permute.xlu0 %1840 }
0x29a9   :  { %v1843_v42 = vmul.f32 %v2527_v40, %v1841_v41 }
0x29ab   :  { %1845 = vrot.lane.b32.xlu1 %v1843_v42, %s2581_s2  ;;  %s1964_s2 = sshll.u32 %s2584_s8, 4  ;;  %s1965_s2 = int_to_ptr.vmem [resolvable:$true] %s1964_s2 }
0x29ac   :  { %s2530_s14 = scalar_lea.vmem %s1965_s2, 64  ;;  %p2535_p1 = scmp.lt.s32.totalorder %s1965_s2, %s1965_s2 }
0x29ad   :  { %p2531_p0 = scmp.ne.s32.totalorder %s1965_s2, %s2530_s14  ;;  %p2536_p2 = scmp.lt.s32.totalorder %s2530_s14, %s2530_s14 }
0x29af   :  { %p2537_p3 = por %p2536_p2, %p2535_p1 }
0x29b1   :  { %p2538_p4 = pnand %p2537_p3, %p2531_p0 }
0x2a1d   :  { %v1846_v43 = vpop.permute.xlu1 %1845 }
0x2a1e   :  { %v1848_v44 = vadd.f32 %v1846_v43, %v1755_v35 }
0x2a20   :  { %2528 = vtanh.f32 %v1848_v44 }
0x2a2a   :  { %v2529_v51 = vpop.eup %2528 }
0x2a2b   :  { %1852 = vrot.lane.b32.xlu0 %v2529_v51, %s2583_s12 }
0x2a9d   :  { %v1853_v53 = vpop.permute.xlu0 %1852 }
0x2a9e   :  { %v1855_v55 = vmul.f32 %v1853_v53, %v1850_v52 }
0x2aa0   :  { %v1857_v56 = vadd.f32 %v1856_v54, %v1855_v55 }
0x2aa2   :  { %1859 = vrot.lane.b32.xlu1 %v1857_v56, %s2583_s12 }
0x2b14   :  { %v1860_v4 = vpop.permute.xlu1 %1859 }
0x2b15   :  { %1863 = vst.msk [vmem:[#allocation6 + $0x2] sm:$0x3] %vm162_vm2, %v1860_v4  ;;  %2313 = vmatmul.mubr.msk.f32.vlgmr.msra.gmra.mrb[16].mxu1 %vm46_vm1, %v1860_v4 }
0x2b16   :  { %2541 = shalt.err (!%p2538_p4)
}
0x2b17   :  { %s2542_s17 = scalar_lea.hbm %s2999_s11, 64 }
0x2b18   :  { %p2543_p5 = scmp.ne.s32.totalorder %s2999_s11, %s2542_s17  ;;  %p2546_p6 = scmp.lt.u32.totalorder %s2542_s17, %s2999_s11 }
0x2b1a   :  { %p2548_p7 = pnand %p2546_p6, %p2543_p5 }
0x2b1c   :  { %2551 = shalt.err (!%p2548_p7)
}
0x2b1d   :  { %s2585_s19 = smov 2   ;;  %v2024_v3 = vld [vmem:[%s2997_s9] ss:$0 sm:$0xff]  ;;  %s2586_s24 = smov [#allocation4]   ;;  %vm1947_vm4 = vcmask 58368  }
0x2b1e   :  { %1970 = dma.vmem_to_hbm [thread:$0]  %s1965_s2, 64, %s2999_s11, [#allocation7], %s2582_s28, %s2582_s28, %s2585_s19  }
0x2b1f   :  { %s1955_s25 = sshll.u32 %s2586_s24, 4  ;;  %s1956_s25 = int_to_ptr.vmem [resolvable:$true] %s1955_s25 }
0x2b20   :  { %s2552_s4 = scalar_lea.vmem %s1956_s25, 32  ;;  %p2557_p9 = scmp.lt.s32.totalorder %s1956_s25, %s1956_s25 }
0x2b21   :  { %p2553_p8 = scmp.ne.s32.totalorder %s1956_s25, %s2552_s4  ;;  %p2558_p10 = scmp.lt.s32.totalorder %s2552_s4, %s2552_s4 }
0x2b23   :  { %p2559_p11 = por %p2558_p10, %p2557_p9 }
0x2b25   :  { %p2560_p12 = pnand %p2559_p11, %p2553_p8 }
0x2be8   :  { %v1943_v57 = vpop.f32.mrb[16].mxu1 }
0x2be9   :  { %v1944_v58 = vadd.f32 %v2024_v3, %v1943_v57  ;;  %v2314_v59 = vpop.f32.mrb[17].mxu1 }
0x2beb   :  { %1948 = vst.msk [vmem:[#allocation4] sm:$0x3] %vm1947_vm4, %v1944_v58 }
0x2bec   :  { %2563 = shalt.err (!%p2560_p12)
}
0x2bed   :  { %s2564_s7 = scalar_lea.hbm %s2998_s10, 32 }
0x2bee   :  { %p2565_p13 = scmp.ne.s32.totalorder %s2998_s10, %s2564_s7  ;;  %p2568_p0 = scmp.lt.u32.totalorder %s2564_s7, %s2998_s10 }
0x2bf0   :  { %p2570_p1 = pnand %p2568_p0, %p2565_p13 }
0x2bf2   :  { %2573 = shalt.err (!%p2570_p1)
}
0x2bf3   :  { %1958 = dma.vmem_to_hbm [thread:$0]  %s1956_s25, 32, %s2998_s10, [#allocation5]  }
0x2bf4   :  { %2574 = dma.done.wait [#allocation5], 32  }
0x2bf5   :  { %2575 = vsyncadd [#allocation5], 4294967264 }
0x2bf6   :  { %2576 = dma.done.wait [#allocation7], 64  }
0x2bf7   :  { %2577 = vsyncadd [#allocation7], 4294967232 }
0x2bf8   :  { %1977 = vsyncpa [#allocation5], 1 }
0x2bf9   :  { %1978 = vsyncpa [#allocation7], 1 }

</bundles_post_ra>
